<compile_context>
chip_gen: v7x
topology: tpu7x:2x2x1
jax: 0.10.0
libtpu: 0.0.40
codegen_flags: <defaults>
</compile_context>

<pallas_src>
import math
import functools

import jax
import jax.numpy as jnp
from jax.experimental import pallas as pl
from jax.experimental.pallas import tpu as pltpu


# ---------------------------------------------------------------------------
# helpers
# ---------------------------------------------------------------------------
def _choose_tile(dim, preferred, align):
    """Largest tile <= preferred that divides `dim` and is a multiple of `align`;
    falls back to the full dim (always a legal block) when nothing fits."""
    if dim <= preferred:
        return dim
    t = (preferred // align) * align
    while t >= align:
        if dim % t == 0:
            return t
        t -= align
    return dim


def _kv_block_pref():
    """Per-generation KV tile: v7x has 64 MiB VMEM/TC -> use smaller KV tiles."""
    try:
        kind = jax.devices()[0].device_kind.lower()
    except Exception:
        return 512
    return 256 if "v7" in kind else 512


# ---------------------------------------------------------------------------
# Tiled matmul kernel:  y = x @ w      (w already transposed to (K, N))
# ---------------------------------------------------------------------------
def _matmul_kernel(x_ref, w_ref, o_ref, acc_ref):
    @pl.when(pl.program_id(2) == 0)
    def _():
        acc_ref[...] = jnp.zeros_like(acc_ref)

    # NOTE: cast x/w tiles to bf16 here (keep f32 accumulation) for 2-4x MXU
    # throughput on v5e/v6e/v7x; kept f32 to match the f32 reference exactly.
    acc_ref[...] += jnp.dot(x_ref[...], w_ref[...],
                            preferred_element_type=jnp.float32)

    @pl.when(pl.program_id(2) == pl.num_programs(2) - 1)
    def _():
        o_ref[...] = acc_ref[...].astype(o_ref.dtype)


def matmul(x, w, *, tm=256, tn=256, tk=512):
    M, K = x.shape
    K2, N = w.shape
    assert K == K2
    tm = _choose_tile(M, tm, 8)
    tn = _choose_tile(N, tn, 128)
    tk = _choose_tile(K, tk, 128)
    grid = (M // tm, N // tn, K // tk)
    return pl.pallas_call(
        _matmul_kernel,
        out_shape=jax.ShapeDtypeStruct((M, N), x.dtype),
        grid=grid,
        in_specs=[pl.BlockSpec((tm, tk), lambda i, j, k: (i, k)),
                  pl.BlockSpec((tk, tn), lambda i, j, k: (k, j))],
        out_specs=pl.BlockSpec((tm, tn), lambda i, j, k: (i, j)),
        scratch_shapes=[pltpu.VMEM((tm, tn), jnp.float32)],
        compiler_params=pltpu.CompilerParams(
            dimension_semantics=("parallel", "parallel", "arbitrary")),
    )(x, w)


# ---------------------------------------------------------------------------
# RoPE kernel: lane-dense elementwise rotation on packed (even | odd) halves.
# Last dim is (Hq+Hkv) * head_dim / 2 (all heads packed), gridded over (B, S).
# ---------------------------------------------------------------------------
def _rope_kernel(xe_ref, xo_ref, cos_ref, sin_ref, oe_ref, oo_ref):
    xe = xe_ref[0]
    xo = xo_ref[0]
    c = cos_ref[...]
    s = sin_ref[...]
    oe_ref[0] = (xe * c - xo * s).astype(oe_ref.dtype)
    oo_ref[0] = (xe * s + xo * c).astype(oo_ref.dtype)


def apply_rotary_packed(xqk, cos, sin, *, s_block=256):
    """xqk: (B, S, H, hd) with H = Hq + Hkv; cos/sin: (S, hd//2)."""
    B, S, H, hd = xqk.shape
    half = hd // 2
    W = H * half
    # TODO(synk): move this even/odd de-interleave (and the re-interleave below)
    # into the kernel with pltpu.roll so the strided pair split never touches HBM.
    xp = xqk.reshape(B, S, H, half, 2)
    xe = xp[..., 0].reshape(B, S, W)
    xo = xp[..., 1].reshape(B, S, W)
    cos_t = jnp.tile(cos, (1, H))            # (S, W) -- column h*half+i <-> pair i
    sin_t = jnp.tile(sin, (1, H))

    s_tile = _choose_tile(S, s_block, 8)
    grid = (B, S // s_tile)
    row_spec = pl.BlockSpec((1, s_tile, W), lambda b, si: (b, si, 0))
    tab_spec = pl.BlockSpec((s_tile, W), lambda b, si: (si, 0))
    oe, oo = pl.pallas_call(
        _rope_kernel,
        out_shape=(jax.ShapeDtypeStruct((B, S, W), xqk.dtype),
                   jax.ShapeDtypeStruct((B, S, W), xqk.dtype)),
        grid=grid,
        in_specs=[row_spec, row_spec, tab_spec, tab_spec],
        out_specs=(row_spec, row_spec),
        compiler_params=pltpu.CompilerParams(
            dimension_semantics=("parallel", "parallel")),
    )(xe, xo, cos_t, sin_t)

    out = jnp.stack([oe.reshape(B, S, H, half),
                     oo.reshape(B, S, H, half)], axis=-1)
    return out.reshape(B, S, H, hd)


# ---------------------------------------------------------------------------
# Flash attention kernel (online softmax over KV tiles).
#   q    : (B, S,  Hq * hd)   -- natural projection layout, no transpose
#   k, v : (B, Tp, Hkv * hd)  -- KV-cache layout, no transpose / no repeat_kv copy
#   out  : (B, S,  Hq * hd)
# GQA: q head h uses kv head h // n_rep, expressed as a static lane slice.
# NOTE: no causal mask, matching the reference PyTorch module.
# ---------------------------------------------------------------------------
def _flash_attn_kernel(q_ref, k_ref, v_ref, o_ref, m_sc, l_sc, acc_sc,
                       *, n_kv_heads, n_rep, head_dim, kv_block, valid_len):
    kv = pl.program_id(2)

    @pl.when(kv == 0)
    def _():
        m_sc[...] = jnp.full_like(m_sc, -jnp.inf)
        l_sc[...] = jnp.zeros_like(l_sc)
        acc_sc[...] = jnp.zeros_like(acc_sc)

    # mask KV positions past the true cache length (start_pos + seq_len)
    col = kv * kv_block + jax.lax.broadcasted_iota(jnp.int32, (1, kv_block), 1)
    col_ok = col < valid_len

    for g in range(n_kv_heads):                      # one K/V load per KV group
        kg = k_ref[0, :, g * head_dim:(g + 1) * head_dim]      # (Tk, hd)
        vg = v_ref[0, :, g * head_dim:(g + 1) * head_dim]      # (Tk, hd)
        for r in range(n_rep):
            h = g * n_rep + r
            qh = q_ref[0, :, h * head_dim:(h + 1) * head_dim]  # (s_tile, hd)
            # 1/sqrt(head_dim) is folded into wq -> no O(S*T) scaling pass here.
            s = jax.lax.dot_general(qh, kg, (((1,), (1,)), ((), ())),
                                    preferred_element_type=jnp.float32)
            s = jnp.where(col_ok, s, -jnp.inf)
            m_prev = m_sc[h]
            m_new = jnp.maximum(m_prev, jnp.max(s, axis=-1, keepdims=True))
            alpha = jnp.exp(m_prev - m_new)
            p = jnp.exp(s - m_new)
            l_sc[h] = alpha * l_sc[h] + jnp.sum(p, axis=-1, keepdims=True)
            acc_sc[h] = alpha * acc_sc[h] + jnp.dot(
                p.astype(vg.dtype), vg, preferred_element_type=jnp.float32)
            m_sc[h] = m_new

    @pl.when(kv == pl.num_programs(2) - 1)
    def _():
        for h in range(n_kv_heads * n_rep):
            # approx=True puts the reciprocal on the EUP (perf knob); exact here
            # to keep the f32 reference comparison tight.
            inv = pl.reciprocal(l_sc[h], approx=False)
            o_ref[0, :, h * head_dim:(h + 1) * head_dim] = (
                acc_sc[h] * inv).astype(o_ref.dtype)


def flash_attention(q, keys, vals, *, n_heads, n_kv_heads, head_dim,
                    kv_block, valid_len, s_block=128):
    B, S, Dq = q.shape
    _, Tp, Dkv = keys.shape
    n_rep = n_heads // n_kv_heads
    assert Dq == n_heads * head_dim and Dkv == n_kv_heads * head_dim
    assert Tp % kv_block == 0
    num_kv = Tp // kv_block
    s_tile = _choose_tile(S, s_block, 8)
    num_s = S // s_tile

    kernel = functools.partial(
        _flash_attn_kernel, n_kv_heads=n_kv_heads, n_rep=n_rep,
        head_dim=head_dim, kv_block=kv_block, valid_len=valid_len)

    return pl.pallas_call(
        kernel,
        out_shape=jax.ShapeDtypeStruct((B, S, Dq), q.dtype),
        grid=(B, num_s, num_kv),                     # parallel axes first, KV last
        in_specs=[
            pl.BlockSpec((1, s_tile, Dq), lambda b, si, kv: (b, si, 0)),
            pl.BlockSpec((1, kv_block, Dkv), lambda b, si, kv: (b, kv, 0)),
            pl.BlockSpec((1, kv_block, Dkv), lambda b, si, kv: (b, kv, 0)),
        ],
        out_specs=pl.BlockSpec((1, s_tile, Dq), lambda b, si, kv: (b, si, 0)),
        scratch_shapes=[
            pltpu.VMEM((n_heads, s_tile, 1), jnp.float32),         # m
            pltpu.VMEM((n_heads, s_tile, 1), jnp.float32),         # l
            pltpu.VMEM((n_heads, s_tile, head_dim), jnp.float32),  # acc
        ],
        compiler_params=pltpu.CompilerParams(
            dimension_semantics=("parallel", "parallel", "arbitrary")),
    )(q, keys, vals)


# ---------------------------------------------------------------------------
# Parameter prep (done ONCE, outside the per-step forward):
#   * transpose PyTorch (out, in) weights to (in, out) for lane-aligned MXU feeds
#   * fuse wq | wk | wv into a single projection matrix
#   * fold 1/sqrt(head_dim) into wq (commutes with RoPE)
# ---------------------------------------------------------------------------
def prepare_params(params, n_heads, dim):
    head_dim = dim // n_heads
    w_qkv = jnp.concatenate(
        [params["wq"].T / math.sqrt(head_dim), params["wk"].T, params["wv"].T],
        axis=1)
    return {"w_qkv": w_qkv, "w_o": params["wo"].T}


# ---------------------------------------------------------------------------
# Full forward pass (mirrors SelfAttention.forward)
# ---------------------------------------------------------------------------
def self_attention_forward(prepared, x, cache_k, cache_v, cos, sin, *,
                           start_pos, n_heads, n_kv_heads,
                           kv_block=None, s_block=128):
    B, S, dim = x.shape
    head_dim = dim // n_heads
    Nq = n_heads * head_dim
    Nk = n_kv_heads * head_dim

    # ---- fused QKV projection (single tiled matmul, x read from HBM once) ----
    x2d = x.reshape(B * S, dim)
    qkv = matmul(x2d, prepared["w_qkv"])                     # (B*S, Nq + 2*Nk)

    # ---- RoPE on Q|K heads together (lane-dense packed kernel) ----
    qk = qkv[:, :Nq + Nk].reshape(B, S, n_heads + n_kv_heads, head_dim)
    qk = apply_rotary_packed(qk, cos, sin)
    xq = qk[:, :, :n_heads].reshape(B, S, Nq)                # (B, S, Hq*hd)
    xk = qk[:, :, n_heads:]                                  # (B, S, Hkv, hd)
    xv = qkv[:, Nq + Nk:].reshape(B, S, n_kv_heads, head_dim)

    # ---- KV-cache write (in place when cache_k/cache_v are donated via jit) ----
    cache_k = jax.lax.dynamic_update_slice(cache_k, xk, (0, start_pos, 0, 0))
    cache_v = jax.lax.dynamic_update_slice(cache_v, xv, (0, start_pos, 0, 0))

    # ---- flash attention straight on the cache layout (no transposes) ----
    T = start_pos + S                                        # static
    if kv_block is None:
        kv_block = _kv_block_pref()
    Tk = min(kv_block, T)
    num_kv = -(-T // Tk)
    Tp = num_kv * Tk
    max_seq = cache_k.shape[1]
    if Tp <= max_seq:
        keys = cache_k[:B, :Tp]
        vals = cache_v[:B, :Tp]
    else:
        keys = jnp.pad(cache_k[:B, :T], ((0, 0), (0, Tp - T), (0, 0), (0, 0)))
        vals = jnp.pad(cache_v[:B, :T], ((0, 0), (0, Tp - T), (0, 0), (0, 0)))
    keys = keys.reshape(B, Tp, Nk)
    vals = vals.reshape(B, Tp, Nk)

    out = flash_attention(xq, keys, vals, n_heads=n_heads,
                          n_kv_heads=n_kv_heads, head_dim=head_dim,
                          kv_block=Tk, valid_len=T, s_block=s_block)

    # ---- output projection ----
    y = matmul(out.reshape(B * S, Nq), prepared["w_o"]).reshape(B, S, dim)
    return y, cache_k, cache_v


# ---------------------------------------------------------------------------
# Pure-JAX reference (same semantics as the PyTorch module) for verification.
# ---------------------------------------------------------------------------
def _reference(params, x, start_pos, cos, sin, cache_k, cache_v,
               n_heads, n_kv_heads):
    B, S, dim = x.shape
    hd = dim // n_heads
    n_rep = n_heads // n_kv_heads

    def rope(t):
        Bb, Ss, Hh, Dd = t.shape
        tp = t.reshape(Bb, Ss, Hh, Dd // 2, 2)
        te, to = tp[..., 0], tp[..., 1]
        c = cos[None, :, None, :]
        s = sin[None, :, None, :]
        return jnp.stack([te * c - to * s, te * s + to * c], -1).reshape(Bb, Ss, Hh, Dd)

    xq = (x @ params["wq"].T).reshape(B, S, n_heads, hd)
    xk = (x @ params["wk"].T).reshape(B, S, n_kv_heads, hd)
    xv = (x @ params["wv"].T).reshape(B, S, n_kv_heads, hd)
    xq, xk = rope(xq), rope(xk)
    cache_k = jax.lax.dynamic_update_slice(cache_k, xk, (0, start_pos, 0, 0))
    cache_v = jax.lax.dynamic_update_slice(cache_v, xv, (0, start_pos, 0, 0))
    keys = jnp.repeat(cache_k[:B, :start_pos + S], n_rep, axis=2)
    vals = jnp.repeat(cache_v[:B, :start_pos + S], n_rep, axis=2)
    q = jnp.transpose(xq, (0, 2, 1, 3))
    k = jnp.transpose(keys, (0, 2, 1, 3))
    v = jnp.transpose(vals, (0, 2, 1, 3))
    s = (q @ jnp.swapaxes(k, -1, -2)) / math.sqrt(hd)
    p = jax.nn.softmax(s.astype(jnp.float32), axis=-1).astype(q.dtype)
    o = jnp.transpose(p @ v, (0, 2, 1, 3)).reshape(B, S, -1)
    return o @ params["wo"].T, cache_k, cache_v


if __name__ == "__main__":
    # Config (small): dim=32, n_heads=4, n_kv_heads=2 -> head_dim=8, n_rep=2
    B, max_seq, dim = 2, 16, 32
    n_heads, n_kv_heads = 4, 2
    head_dim = dim // n_heads
    S, start_pos = 8, 4
    theta = 10000.0

    key = jax.random.PRNGKey(0)
    kx, kq, kk, kv, ko = jax.random.split(key, 5)
    bq = 1.0 / math.sqrt(dim)
    bo = 1.0 / math.sqrt(n_heads * head_dim)
    params = {
        "wq": jax.random.uniform(kq, (n_heads * head_dim, dim), jnp.float32, -bq, bq),
        "wk": jax.random.uniform(kk, (n_kv_heads * head_dim, dim), jnp.float32, -bq, bq),
        "wv": jax.random.uniform(kv, (n_kv_heads * head_dim, dim), jnp.float32, -bq, bq),
        "wo": jax.random.uniform(ko, (dim, n_heads * head_dim), jnp.float32, -bo, bo),
    }
    x = jax.random.normal(kx, (B, S, dim), jnp.float32)

    # freqs_complex equivalent (cos/sin) for positions [start_pos, start_pos + S)
    inv_freq = 1.0 / (theta ** (jnp.arange(0, head_dim, 2, dtype=jnp.float32) / head_dim))
    pos = jnp.arange(start_pos, start_pos + S, dtype=jnp.float32)
    angles = pos[:, None] * inv_freq[None, :]                 # (S, head_dim//2)
    cos, sin = jnp.cos(angles), jnp.sin(angles)

    cache_k = jnp.zeros((B, max_seq, n_kv_heads, head_dim), jnp.float32)
    cache_v = jnp.zeros((B, max_seq, n_kv_heads, head_dim), jnp.float32)

    # Reference first (it only reads the caches; originals stay valid until the
    # donating jitted call below consumes them).
    y_ref, ck_ref, cv_ref = _reference(params, x, start_pos, cos, sin,
                                       cache_k, cache_v, n_heads, n_kv_heads)

    prepared = prepare_params(params, n_heads, dim)
    fwd = jax.jit(
        functools.partial(self_attention_forward, start_pos=start_pos,
                          n_heads=n_heads, n_kv_heads=n_kv_heads),
        donate_argnums=(2, 3),       # in-place KV-cache update
    )
    y, ck, cv = fwd(prepared, x, cache_k, cache_v, cos, sin)
    jax.block_until_ready((y, ck, cv))

    assert jnp.allclose(y, y_ref, atol=2e-5, rtol=1e-5), "output mismatch vs reference"
    assert jnp.allclose(ck, ck_ref, atol=2e-5, rtol=1e-5), "cache_k mismatch vs reference"
    assert jnp.allclose(cv, cv_ref, atol=2e-5, rtol=1e-5), "cache_v mismatch vs reference"

    print("KERNEL_OK")
</pallas_src>

<mosaic_0001>
module attributes {stable_mosaic.version = 11 : i64} {
  func.func @_matmul_kernel(%arg0: i32, %arg1: i32, %arg2: i32, %arg3: memref<16x32xf32, #tpu.memory_space<vmem>>, %arg4: memref<32x64xf32, #tpu.memory_space<vmem>>, %arg5: memref<16x64xf32, #tpu.memory_space<vmem>>, %arg6: memref<16x64xf32, #tpu.memory_space<vmem>>) attributes {dimension_semantics = [#tpu.dimension_semantics<parallel>, #tpu.dimension_semantics<parallel>, #tpu.dimension_semantics<arbitrary>], iteration_bounds = array<i64: 1, 1, 1>, scalar_prefetch = 0 : i64, scratch_operands = 1 : i64, tpu.core_type = #tpu.core_type<tc>, window_params = [{transform_indices = @transform_0, window_bounds = array<i64: 16, 32>}, {transform_indices = @transform_1, window_bounds = array<i64: 32, 64>}, {transform_indices = @transform_2, window_bounds = array<i64: 16, 64>}]} {
    %c0_i32 = arith.constant 0 : i32
    %0 = arith.cmpi eq, %arg2, %c0_i32 : i32
    %1 = arith.extui %0 : i1 to i32
    %c0_i32_0 = arith.constant 0 : i32
    %2 = arith.cmpi ne, %1, %c0_i32_0 : i32
    scf.if %2 {
      %cst_10 = arith.constant 0.000000e+00 : f32
      %12 = vector.broadcast %cst_10 : f32 to vector<16x64xf32>
      %c0_11 = arith.constant 0 : index
      %c0_12 = arith.constant 0 : index
      %13 = vector.load %arg6[%c0_11, %c0_12] : memref<16x64xf32, #tpu.memory_space<vmem>>, vector<16x64xf32>
      tpu.vector_store %arg6[%c0_11, %c0_12], %12 {strides = array<i32>} : memref<16x64xf32, #tpu.memory_space<vmem>>, vector<16x64xf32>,
    } else {
    }
    %c0 = arith.constant 0 : index
    %c0_1 = arith.constant 0 : index
    %3 = vector.load %arg6[%c0, %c0_1] : memref<16x64xf32, #tpu.memory_space<vmem>>, vector<16x64xf32>
    %c0_2 = arith.constant 0 : index
    %c0_3 = arith.constant 0 : index
    %4 = vector.load %arg3[%c0_2, %c0_3] : memref<16x32xf32, #tpu.memory_space<vmem>>, vector<16x32xf32>
    %c0_4 = arith.constant 0 : index
    %c0_5 = arith.constant 0 : index
    %5 = vector.load %arg4[%c0_4, %c0_5] : memref<32x64xf32, #tpu.memory_space<vmem>>, vector<32x64xf32>
    %cst = arith.constant dense<0.000000e+00> : vector<16x64xf32>
    %6 = tpu.matmul %4, %5, %cst {dimension_numbers = #tpu.dot_dimension_numbers<[1], [0], [0], [1], [0, 0, 1, 1], [], []>} : vector<16x32xf32>, vector<32x64xf32>, vector<16x64xf32> -> vector<16x64xf32>
    %7 = arith.addf %3, %6 : vector<16x64xf32>
    %c0_6 = arith.constant 0 : index
    %c0_7 = arith.constant 0 : index
    %8 = vector.load %arg6[%c0_6, %c0_7] : memref<16x64xf32, #tpu.memory_space<vmem>>, vector<16x64xf32>
    tpu.vector_store %arg6[%c0_6, %c0_7], %7 {strides = array<i32>} : memref<16x64xf32, #tpu.memory_space<vmem>>, vector<16x64xf32>,
    %c0_i32_8 = arith.constant 0 : i32
    %9 = arith.cmpi eq, %arg2, %c0_i32_8 : i32
    %10 = arith.extui %9 : i1 to i32
    %c0_i32_9 = arith.constant 0 : i32
    %11 = arith.cmpi ne, %10, %c0_i32_9 : i32
    scf.if %11 {
      %c0_10 = arith.constant 0 : index
      %c0_11 = arith.constant 0 : index
      %12 = vector.load %arg6[%c0_10, %c0_11] : memref<16x64xf32, #tpu.memory_space<vmem>>, vector<16x64xf32>
      %c0_12 = arith.constant 0 : index
      %c0_13 = arith.constant 0 : index
      %13 = vector.load %arg5[%c0_12, %c0_13] : memref<16x64xf32, #tpu.memory_space<vmem>>, vector<16x64xf32>
      tpu.vector_store %arg5[%c0_12, %c0_13], %12 {strides = array<i32>} : memref<16x64xf32, #tpu.memory_space<vmem>>, vector<16x64xf32>,
    } else {
    }
    return
  }
  func.func @transform_0(%arg0: i32, %arg1: i32, %arg2: i32) -> (i32, i32) {
    %c0_i32 = arith.constant 0 : i32
    return %arg0, %arg2 : i32, i32
  }
  func.func @transform_1(%arg0: i32, %arg1: i32, %arg2: i32) -> (i32, i32) {
    %c0_i32 = arith.constant 0 : i32
    return %arg2, %arg1 : i32, i32
  }
  func.func @transform_2(%arg0: i32, %arg1: i32, %arg2: i32) -> (i32, i32) {
    %c0_i32 = arith.constant 0 : i32
    return %arg0, %arg1 : i32, i32
  }
}

module attributes {stable_mosaic.version = 11 : i64} {
  func.func @_rope_kernel(%arg0: i32, %arg1: i32, %arg2: memref<1x8x24xf32, #tpu.memory_space<vmem>>, %arg3: memref<1x8x24xf32, #tpu.memory_space<vmem>>, %arg4: memref<8x24xf32, #tpu.memory_space<vmem>>, %arg5: memref<8x24xf32, #tpu.memory_space<vmem>>, %arg6: memref<1x8x24xf32, #tpu.memory_space<vmem>>, %arg7: memref<1x8x24xf32, #tpu.memory_space<vmem>>) attributes {dimension_semantics = [#tpu.dimension_semantics<parallel>, #tpu.dimension_semantics<parallel>], iteration_bounds = array<i64: 2, 1>, scalar_prefetch = 0 : i64, scratch_operands = 0 : i64, tpu.core_type = #tpu.core_type<tc>, window_params = [{transform_indices = @transform_0, window_bounds = array<i64: 1, 8, 24>}, {transform_indices = @transform_1, window_bounds = array<i64: 1, 8, 24>}, {transform_indices = @transform_2, window_bounds = array<i64: 8, 24>}, {transform_indices = @transform_3, window_bounds = array<i64: 8, 24>}, {transform_indices = @transform_4, window_bounds = array<i64: 1, 8, 24>}, {transform_indices = @transform_5, window_bounds = array<i64: 1, 8, 24>}]} {
    %c0 = arith.constant 0 : index
    %c0_0 = arith.constant 0 : index
    %c0_1 = arith.constant 0 : index
    %0 = vector.load %arg2[%c0, %c0_0, %c0_1] : memref<1x8x24xf32, #tpu.memory_space<vmem>>, vector<1x8x24xf32>
    %1 = vector.shape_cast %0 : vector<1x8x24xf32> to vector<8x24xf32>
    %c0_2 = arith.constant 0 : index
    %c0_3 = arith.constant 0 : index
    %c0_4 = arith.constant 0 : index
    %2 = vector.load %arg3[%c0_2, %c0_3, %c0_4] : memref<1x8x24xf32, #tpu.memory_space<vmem>>, vector<1x8x24xf32>
    %3 = vector.shape_cast %2 : vector<1x8x24xf32> to vector<8x24xf32>
    %c0_5 = arith.constant 0 : index
    %c0_6 = arith.constant 0 : index
    %4 = vector.load %arg4[%c0_5, %c0_6] : memref<8x24xf32, #tpu.memory_space<vmem>>, vector<8x24xf32>
    %c0_7 = arith.constant 0 : index
    %c0_8 = arith.constant 0 : index
    %5 = vector.load %arg5[%c0_7, %c0_8] : memref<8x24xf32, #tpu.memory_space<vmem>>, vector<8x24xf32>
    %6 = arith.mulf %1, %4 : vector<8x24xf32>
    %7 = arith.mulf %3, %5 : vector<8x24xf32>
    %8 = arith.subf %6, %7 : vector<8x24xf32>
    %c0_9 = arith.constant 0 : index
    %c0_10 = arith.constant 0 : index
    %c0_11 = arith.constant 0 : index
    %9 = vector.load %arg6[%c0_9, %c0_10, %c0_11] : memref<1x8x24xf32, #tpu.memory_space<vmem>>, vector<1x8x24xf32>
    %10 = vector.shape_cast %9 : vector<1x8x24xf32> to vector<8x24xf32>
    %11 = vector.shape_cast %8 : vector<8x24xf32> to vector<1x8x24xf32>
    tpu.vector_store %arg6[%c0_9, %c0_10, %c0_11], %11 {strides = array<i32>} : memref<1x8x24xf32, #tpu.memory_space<vmem>>, vector<1x8x24xf32>,
    %12 = arith.mulf %1, %5 : vector<8x24xf32>
    %13 = arith.mulf %3, %4 : vector<8x24xf32>
    %14 = arith.addf %12, %13 : vector<8x24xf32>
    %c0_12 = arith.constant 0 : index
    %c0_13 = arith.constant 0 : index
    %c0_14 = arith.constant 0 : index
    %15 = vector.load %arg7[%c0_12, %c0_13, %c0_14] : memref<1x8x24xf32, #tpu.memory_space<vmem>>, vector<1x8x24xf32>
    %16 = vector.shape_cast %15 : vector<1x8x24xf32> to vector<8x24xf32>
    %17 = vector.shape_cast %14 : vector<8x24xf32> to vector<1x8x24xf32>
    tpu.vector_store %arg7[%c0_12, %c0_13, %c0_14], %17 {strides = array<i32>} : memref<1x8x24xf32, #tpu.memory_space<vmem>>, vector<1x8x24xf32>,
    return
  }
  func.func @transform_0(%arg0: i32, %arg1: i32) -> (i32, i32, i32) {
    %c0_i32 = arith.constant 0 : i32
    %c0_i32_0 = arith.constant 0 : i32
    return %arg0, %arg1, %c0_i32 : i32, i32, i32
  }
  func.func @transform_1(%arg0: i32, %arg1: i32) -> (i32, i32, i32) {
    %c0_i32 = arith.constant 0 : i32
    %c0_i32_0 = arith.constant 0 : i32
    return %arg0, %arg1, %c0_i32 : i32, i32, i32
  }
  func.func @transform_2(%arg0: i32, %arg1: i32) -> (i32, i32) {
    %c0_i32 = arith.constant 0 : i32
    %c0_i32_0 = arith.constant 0 : i32
    return %arg1, %c0_i32 : i32, i32
  }
  func.func @transform_3(%arg0: i32, %arg1: i32) -> (i32, i32) {
    %c0_i32 = arith.constant 0 : i32
    %c0_i32_0 = arith.constant 0 : i32
    return %arg1, %c0_i32 : i32, i32
  }
  func.func @transform_4(%arg0: i32, %arg1: i32) -> (i32, i32, i32) {
    %c0_i32 = arith.constant 0 : i32
    %c0_i32_0 = arith.constant 0 : i32
    return %arg0, %arg1, %c0_i32 : i32, i32, i32
  }
  func.func @transform_5(%arg0: i32, %arg1: i32) -> (i32, i32, i32) {
    %c0_i32 = arith.constant 0 : i32
    %c0_i32_0 = arith.constant 0 : i32
    return %arg0, %arg1, %c0_i32 : i32, i32, i32
  }
}

module attributes {stable_mosaic.version = 11 : i64} {
  func.func @_flash_attn_kernel(%arg0: i32, %arg1: i32, %arg2: i32, %arg3: memref<1x8x32xf32, #tpu.memory_space<vmem>>, %arg4: memref<1x12x16xf32, #tpu.memory_space<vmem>>, %arg5: memref<1x12x16xf32, #tpu.memory_space<vmem>>, %arg6: memref<1x8x32xf32, #tpu.memory_space<vmem>>, %arg7: memref<4x8x1xf32, #tpu.memory_space<vmem>>, %arg8: memref<4x8x1xf32, #tpu.memory_space<vmem>>, %arg9: memref<4x8x8xf32, #tpu.memory_space<vmem>>) attributes {dimension_semantics = [#tpu.dimension_semantics<parallel>, #tpu.dimension_semantics<parallel>, #tpu.dimension_semantics<arbitrary>], iteration_bounds = array<i64: 2, 1, 1>, scalar_prefetch = 0 : i64, scratch_operands = 3 : i64, tpu.core_type = #tpu.core_type<tc>, window_params = [{transform_indices = @transform_0, window_bounds = array<i64: 1, 8, 32>}, {transform_indices = @transform_1, window_bounds = array<i64: 1, 12, 16>}, {transform_indices = @transform_2, window_bounds = array<i64: 1, 12, 16>}, {transform_indices = @transform_3, window_bounds = array<i64: 1, 8, 32>}]} {
    %c0_i32 = arith.constant 0 : i32
    %0 = arith.cmpi eq, %arg2, %c0_i32 : i32
    %1 = arith.extui %0 : i1 to i32
    %c0_i32_0 = arith.constant 0 : i32
    %2 = arith.cmpi ne, %1, %c0_i32_0 : i32
    scf.if %2 {
      %cst_112 = arith.constant 0xFF800000 : f32
      %172 = vector.broadcast %cst_112 : f32 to vector<4x8x1xf32>
      %c0_113 = arith.constant 0 : index
      %c0_114 = arith.constant 0 : index
      %c0_115 = arith.constant 0 : index
      %173 = vector.load %arg7[%c0_113, %c0_114, %c0_115] : memref<4x8x1xf32, #tpu.memory_space<vmem>>, vector<4x8x1xf32>
      tpu.vector_store %arg7[%c0_113, %c0_114, %c0_115], %172 {strides = array<i32>} : memref<4x8x1xf32, #tpu.memory_space<vmem>>, vector<4x8x1xf32>,
      %cst_116 = arith.constant 0.000000e+00 : f32
      %174 = vector.broadcast %cst_116 : f32 to vector<4x8x1xf32>
      %c0_117 = arith.constant 0 : index
      %c0_118 = arith.constant 0 : index
      %c0_119 = arith.constant 0 : index
      %175 = vector.load %arg8[%c0_117, %c0_118, %c0_119] : memref<4x8x1xf32, #tpu.memory_space<vmem>>, vector<4x8x1xf32>
      tpu.vector_store %arg8[%c0_117, %c0_118, %c0_119], %174 {strides = array<i32>} : memref<4x8x1xf32, #tpu.memory_space<vmem>>, vector<4x8x1xf32>,
      %cst_120 = arith.constant 0.000000e+00 : f32
      %176 = vector.broadcast %cst_120 : f32 to vector<4x8x8xf32>
      %c0_121 = arith.constant 0 : index
      %c0_122 = arith.constant 0 : index
      %c0_123 = arith.constant 0 : index
      %177 = vector.load %arg9[%c0_121, %c0_122, %c0_123] : memref<4x8x8xf32, #tpu.memory_space<vmem>>, vector<4x8x8xf32>
      tpu.vector_store %arg9[%c0_121, %c0_122, %c0_123], %176 {strides = array<i32>} : memref<4x8x8xf32, #tpu.memory_space<vmem>>, vector<4x8x8xf32>,
    } else {
    }
    %c12_i32 = arith.constant 12 : i32
    %3 = arith.muli %arg2, %c12_i32 : i32
    %4 = tpu.iota {dimensions = array<i32: 1>} : vector<1x12xi32>
    %5 = vector.broadcast %3 : i32 to vector<1x12xi32>
    %6 = arith.addi %5, %4 : vector<1x12xi32>
    %c12_i32_1 = arith.constant 12 : i32
    %7 = vector.broadcast %c12_i32_1 : i32 to vector<1x12xi32>
    %8 = arith.cmpi slt, %6, %7 : vector<1x12xi32>
    %c0 = arith.constant 0 : index
    %c0_2 = arith.constant 0 : index
    %c0_3 = arith.constant 0 : index
    %9 = vector.load %arg4[%c0, %c0_2, %c0_3] : memref<1x12x16xf32, #tpu.memory_space<vmem>>, vector<1x12x8xf32>
    %10 = vector.shape_cast %9 : vector<1x12x8xf32> to vector<12x8xf32>
    %c0_4 = arith.constant 0 : index
    %c0_5 = arith.constant 0 : index
    %c0_6 = arith.constant 0 : index
    %11 = vector.load %arg5[%c0_4, %c0_5, %c0_6] : memref<1x12x16xf32, #tpu.memory_space<vmem>>, vector<1x12x8xf32>
    %12 = vector.shape_cast %11 : vector<1x12x8xf32> to vector<12x8xf32>
    %c0_7 = arith.constant 0 : index
    %c0_8 = arith.constant 0 : index
    %c0_9 = arith.constant 0 : index
    %13 = vector.load %arg3[%c0_7, %c0_8, %c0_9] : memref<1x8x32xf32, #tpu.memory_space<vmem>>, vector<1x8x8xf32>
    %14 = vector.shape_cast %13 : vector<1x8x8xf32> to vector<8x8xf32>
    %cst = arith.constant dense<0.000000e+00> : vector<8x12xf32>
    %15 = tpu.matmul %14, %10, %cst {dimension_numbers = #tpu.dot_dimension_numbers<[1], [1], [0], [0], [0, 0, 1, 0], [], []>} : vector<8x8xf32>, vector<12x8xf32>, vector<8x12xf32> -> vector<8x12xf32>
    %cst_10 = arith.constant 0xFF800000 : f32
    %16 = vector.shape_cast %8 : vector<1x12xi1> to vector<1x12xi1>
    %17 = vector.broadcast %16 : vector<1x12xi1> to vector<8x12xi1>
    %18 = vector.broadcast %cst_10 : f32 to vector<8x12xf32>
    %19 = arith.select %17, %15, %18 : vector<8x12xi1>, vector<8x12xf32>
    %c0_11 = arith.constant 0 : index
    %c0_12 = arith.constant 0 : index
    %c0_13 = arith.constant 0 : index
    %20 = vector.load %arg7[%c0_11, %c0_12, %c0_13] : memref<4x8x1xf32, #tpu.memory_space<vmem>>, vector<1x8x1xf32>
    %21 = vector.shape_cast %20 : vector<1x8x1xf32> to vector<8x1xf32>
    %cst_14 = arith.constant dense<0xFF800000> : vector<8xf32>
    %22 = vector.multi_reduction <maximumf>, %19, %cst_14 [1] : vector<8x12xf32> to vector<8xf32>
    %23 = vector.shape_cast %22 : vector<8xf32> to vector<8x1xf32>
    %24 = arith.maximumf %21, %23 : vector<8x1xf32>
    %25 = arith.subf %21, %24 : vector<8x1xf32>
    %26 = math.exp %25 : vector<8x1xf32>
    %27 = vector.broadcast %24 : vector<8x1xf32> to vector<8x12xf32>
    %28 = arith.subf %19, %27 : vector<8x12xf32>
    %29 = math.exp %28 : vector<8x12xf32>
    %c0_15 = arith.constant 0 : index
    %c0_16 = arith.constant 0 : index
    %c0_17 = arith.constant 0 : index
    %30 = vector.load %arg8[%c0_15, %c0_16, %c0_17] : memref<4x8x1xf32, #tpu.memory_space<vmem>>, vector<1x8x1xf32>
    %31 = vector.shape_cast %30 : vector<1x8x1xf32> to vector<8x1xf32>
    %32 = arith.mulf %26, %31 : vector<8x1xf32>
    %cst_18 = arith.constant dense<0.000000e+00> : vector<8xf32>
    %33 = vector.multi_reduction <add>, %29, %cst_18 [1] : vector<8x12xf32> to vector<8xf32>
    %34 = vector.shape_cast %33 : vector<8xf32> to vector<8x1xf32>
    %35 = arith.addf %32, %34 : vector<8x1xf32>
    %c0_19 = arith.constant 0 : index
    %c0_20 = arith.constant 0 : index
    %c0_21 = arith.constant 0 : index
    %36 = vector.load %arg8[%c0_19, %c0_20, %c0_21] : memref<4x8x1xf32, #tpu.memory_space<vmem>>, vector<1x8x1xf32>
    %37 = vector.shape_cast %36 : vector<1x8x1xf32> to vector<8x1xf32>
    %38 = vector.shape_cast %35 : vector<8x1xf32> to vector<1x8x1xf32>
    tpu.vector_store %arg8[%c0_19, %c0_20, %c0_21], %38 {strides = array<i32>} : memref<4x8x1xf32, #tpu.memory_space<vmem>>, vector<1x8x1xf32>,
    %c0_22 = arith.constant 0 : index
    %c0_23 = arith.constant 0 : index
    %c0_24 = arith.constant 0 : index
    %39 = vector.load %arg9[%c0_22, %c0_23, %c0_24] : memref<4x8x8xf32, #tpu.memory_space<vmem>>, vector<1x8x8xf32>
    %40 = vector.shape_cast %39 : vector<1x8x8xf32> to vector<8x8xf32>
    %41 = vector.broadcast %26 : vector<8x1xf32> to vector<8x8xf32>
    %42 = arith.mulf %41, %40 : vector<8x8xf32>
    %cst_25 = arith.constant dense<0.000000e+00> : vector<8x8xf32>
    %43 = tpu.matmul %29, %12, %cst_25 {dimension_numbers = #tpu.dot_dimension_numbers<[1], [0], [0], [1], [0, 0, 1, 1], [], []>} : vector<8x12xf32>, vector<12x8xf32>, vector<8x8xf32> -> vector<8x8xf32>
    %44 = arith.addf %42, %43 : vector<8x8xf32>
    %c0_26 = arith.constant 0 : index
    %c0_27 = arith.constant 0 : index
    %c0_28 = arith.constant 0 : index
    %45 = vector.load %arg9[%c0_26, %c0_27, %c0_28] : memref<4x8x8xf32, #tpu.memory_space<vmem>>, vector<1x8x8xf32>
    %46 = vector.shape_cast %45 : vector<1x8x8xf32> to vector<8x8xf32>
    %47 = vector.shape_cast %44 : vector<8x8xf32> to vector<1x8x8xf32>
    tpu.vector_store %arg9[%c0_26, %c0_27, %c0_28], %47 {strides = array<i32>} : memref<4x8x8xf32, #tpu.memory_space<vmem>>, vector<1x8x8xf32>,
    %c0_29 = arith.constant 0 : index
    %c0_30 = arith.constant 0 : index
    %c0_31 = arith.constant 0 : index
    %48 = vector.load %arg7[%c0_29, %c0_30, %c0_31] : memref<4x8x1xf32, #tpu.memory_space<vmem>>, vector<1x8x1xf32>
    %49 = vector.shape_cast %48 : vector<1x8x1xf32> to vector<8x1xf32>
    %50 = vector.shape_cast %24 : vector<8x1xf32> to vector<1x8x1xf32>
    tpu.vector_store %arg7[%c0_29, %c0_30, %c0_31], %50 {strides = array<i32>} : memref<4x8x1xf32, #tpu.memory_space<vmem>>, vector<1x8x1xf32>,
    %c0_32 = arith.constant 0 : index
    %c0_33 = arith.constant 0 : index
    %c8 = arith.constant 8 : index
    %51 = vector.load %arg3[%c0_32, %c0_33, %c8] : memref<1x8x32xf32, #tpu.memory_space<vmem>>, vector<1x8x8xf32>
    %52 = vector.shape_cast %51 : vector<1x8x8xf32> to vector<8x8xf32>
    %cst_34 = arith.constant dense<0.000000e+00> : vector<8x12xf32>
    %53 = tpu.matmul %52, %10, %cst_34 {dimension_numbers = #tpu.dot_dimension_numbers<[1], [1], [0], [0], [0, 0, 1, 0], [], []>} : vector<8x8xf32>, vector<12x8xf32>, vector<8x12xf32> -> vector<8x12xf32>
    %cst_35 = arith.constant 0xFF800000 : f32
    %54 = vector.shape_cast %8 : vector<1x12xi1> to vector<1x12xi1>
    %55 = vector.broadcast %54 : vector<1x12xi1> to vector<8x12xi1>
    %56 = vector.broadcast %cst_35 : f32 to vector<8x12xf32>
    %57 = arith.select %55, %53, %56 : vector<8x12xi1>, vector<8x12xf32>
    %c1 = arith.constant 1 : index
    %c0_36 = arith.constant 0 : index
    %c0_37 = arith.constant 0 : index
    %58 = vector.load %arg7[%c1, %c0_36, %c0_37] : memref<4x8x1xf32, #tpu.memory_space<vmem>>, vector<1x8x1xf32>
    %59 = vector.shape_cast %58 : vector<1x8x1xf32> to vector<8x1xf32>
    %cst_38 = arith.constant dense<0xFF800000> : vector<8xf32>
    %60 = vector.multi_reduction <maximumf>, %57, %cst_38 [1] : vector<8x12xf32> to vector<8xf32>
    %61 = vector.shape_cast %60 : vector<8xf32> to vector<8x1xf32>
    %62 = arith.maximumf %59, %61 : vector<8x1xf32>
    %63 = arith.subf %59, %62 : vector<8x1xf32>
    %64 = math.exp %63 : vector<8x1xf32>
    %65 = vector.broadcast %62 : vector<8x1xf32> to vector<8x12xf32>
    %66 = arith.subf %57, %65 : vector<8x12xf32>
    %67 = math.exp %66 : vector<8x12xf32>
    %c1_39 = arith.constant 1 : index
    %c0_40 = arith.constant 0 : index
    %c0_41 = arith.constant 0 : index
    %68 = vector.load %arg8[%c1_39, %c0_40, %c0_41] : memref<4x8x1xf32, #tpu.memory_space<vmem>>, vector<1x8x1xf32>
    %69 = vector.shape_cast %68 : vector<1x8x1xf32> to vector<8x1xf32>
    %70 = arith.mulf %64, %69 : vector<8x1xf32>
    %cst_42 = arith.constant dense<0.000000e+00> : vector<8xf32>
    %71 = vector.multi_reduction <add>, %67, %cst_42 [1] : vector<8x12xf32> to vector<8xf32>
    %72 = vector.shape_cast %71 : vector<8xf32> to vector<8x1xf32>
    %73 = arith.addf %70, %72 : vector<8x1xf32>
    %c1_43 = arith.constant 1 : index
    %c0_44 = arith.constant 0 : index
    %c0_45 = arith.constant 0 : index
    %74 = vector.load %arg8[%c1_43, %c0_44, %c0_45] : memref<4x8x1xf32, #tpu.memory_space<vmem>>, vector<1x8x1xf32>
    %75 = vector.shape_cast %74 : vector<1x8x1xf32> to vector<8x1xf32>
    %76 = vector.shape_cast %73 : vector<8x1xf32> to vector<1x8x1xf32>
    tpu.vector_store %arg8[%c1_43, %c0_44, %c0_45], %76 {strides = array<i32>} : memref<4x8x1xf32, #tpu.memory_space<vmem>>, vector<1x8x1xf32>,
    %c1_46 = arith.constant 1 : index
    %c0_47 = arith.constant 0 : index
    %c0_48 = arith.constant 0 : index
    %77 = vector.load %arg9[%c1_46, %c0_47, %c0_48] : memref<4x8x8xf32, #tpu.memory_space<vmem>>, vector<1x8x8xf32>
    %78 = vector.shape_cast %77 : vector<1x8x8xf32> to vector<8x8xf32>
    %79 = vector.broadcast %64 : vector<8x1xf32> to vector<8x8xf32>
    %80 = arith.mulf %79, %78 : vector<8x8xf32>
    %cst_49 = arith.constant dense<0.000000e+00> : vector<8x8xf32>
    %81 = tpu.matmul %67, %12, %cst_49 {dimension_numbers = #tpu.dot_dimension_numbers<[1], [0], [0], [1], [0, 0, 1, 1], [], []>} : vector<8x12xf32>, vector<12x8xf32>, vector<8x8xf32> -> vector<8x8xf32>
    %82 = arith.addf %80, %81 : vector<8x8xf32>
    %c1_50 = arith.constant 1 : index
    %c0_51 = arith.constant 0 : index
    %c0_52 = arith.constant 0 : index
    %83 = vector.load %arg9[%c1_50, %c0_51, %c0_52] : memref<4x8x8xf32, #tpu.memory_space<vmem>>, vector<1x8x8xf32>
    %84 = vector.shape_cast %83 : vector<1x8x8xf32> to vector<8x8xf32>
    %85 = vector.shape_cast %82 : vector<8x8xf32> to vector<1x8x8xf32>
    tpu.vector_store %arg9[%c1_50, %c0_51, %c0_52], %85 {strides = array<i32>} : memref<4x8x8xf32, #tpu.memory_space<vmem>>, vector<1x8x8xf32>,
    %c1_53 = arith.constant 1 : index
    %c0_54 = arith.constant 0 : index
    %c0_55 = arith.constant 0 : index
    %86 = vector.load %arg7[%c1_53, %c0_54, %c0_55] : memref<4x8x1xf32, #tpu.memory_space<vmem>>, vector<1x8x1xf32>
    %87 = vector.shape_cast %86 : vector<1x8x1xf32> to vector<8x1xf32>
    %88 = vector.shape_cast %62 : vector<8x1xf32> to vector<1x8x1xf32>
    tpu.vector_store %arg7[%c1_53, %c0_54, %c0_55], %88 {strides = array<i32>} : memref<4x8x1xf32, #tpu.memory_space<vmem>>, vector<1x8x1xf32>,
    %c0_56 = arith.constant 0 : index
    %c0_57 = arith.constant 0 : index
    %c8_58 = arith.constant 8 : index
    %89 = vector.load %arg4[%c0_56, %c0_57, %c8_58] : memref<1x12x16xf32, #tpu.memory_space<vmem>>, vector<1x12x8xf32>
    %90 = vector.shape_cast %89 : vector<1x12x8xf32> to vector<12x8xf32>
    %c0_59 = arith.constant 0 : index
    %c0_60 = arith.constant 0 : index
    %c8_61 = arith.constant 8 : index
    %91 = vector.load %arg5[%c0_59, %c0_60, %c8_61] : memref<1x12x16xf32, #tpu.memory_space<vmem>>, vector<1x12x8xf32>
    %92 = vector.shape_cast %91 : vector<1x12x8xf32> to vector<12x8xf32>
    %c0_62 = arith.constant 0 : index
    %c0_63 = arith.constant 0 : index
    %c16 = arith.constant 16 : index
    %93 = vector.load %arg3[%c0_62, %c0_63, %c16] : memref<1x8x32xf32, #tpu.memory_space<vmem>>, vector<1x8x8xf32>
    %94 = vector.shape_cast %93 : vector<1x8x8xf32> to vector<8x8xf32>
    %cst_64 = arith.constant dense<0.000000e+00> : vector<8x12xf32>
    %95 = tpu.matmul %94, %90, %cst_64 {dimension_numbers = #tpu.dot_dimension_numbers<[1], [1], [0], [0], [0, 0, 1, 0], [], []>} : vector<8x8xf32>, vector<12x8xf32>, vector<8x12xf32> -> vector<8x12xf32>
    %cst_65 = arith.constant 0xFF800000 : f32
    %96 = vector.shape_cast %8 : vector<1x12xi1> to vector<1x12xi1>
    %97 = vector.broadcast %96 : vector<1x12xi1> to vector<8x12xi1>
    %98 = vector.broadcast %cst_65 : f32 to vector<8x12xf32>
    %99 = arith.select %97, %95, %98 : vector<8x12xi1>, vector<8x12xf32>
    %c2 = arith.constant 2 : index
    %c0_66 = arith.constant 0 : index
    %c0_67 = arith.constant 0 : index
    %100 = vector.load %arg7[%c2, %c0_66, %c0_67] : memref<4x8x1xf32, #tpu.memory_space<vmem>>, vector<1x8x1xf32>
    %101 = vector.shape_cast %100 : vector<1x8x1xf32> to vector<8x1xf32>
    %cst_68 = arith.constant dense<0xFF800000> : vector<8xf32>
    %102 = vector.multi_reduction <maximumf>, %99, %cst_68 [1] : vector<8x12xf32> to vector<8xf32>
    %103 = vector.shape_cast %102 : vector<8xf32> to vector<8x1xf32>
    %104 = arith.maximumf %101, %103 : vector<8x1xf32>
    %105 = arith.subf %101, %104 : vector<8x1xf32>
    %106 = math.exp %105 : vector<8x1xf32>
    %107 = vector.broadcast %104 : vector<8x1xf32> to vector<8x12xf32>
    %108 = arith.subf %99, %107 : vector<8x12xf32>
    %109 = math.exp %108 : vector<8x12xf32>
    %c2_69 = arith.constant 2 : index
    %c0_70 = arith.constant 0 : index
    %c0_71 = arith.constant 0 : index
    %110 = vector.load %arg8[%c2_69, %c0_70, %c0_71] : memref<4x8x1xf32, #tpu.memory_space<vmem>>, vector<1x8x1xf32>
    %111 = vector.shape_cast %110 : vector<1x8x1xf32> to vector<8x1xf32>
    %112 = arith.mulf %106, %111 : vector<8x1xf32>
    %cst_72 = arith.constant dense<0.000000e+00> : vector<8xf32>
    %113 = vector.multi_reduction <add>, %109, %cst_72 [1] : vector<8x12xf32> to vector<8xf32>
    %114 = vector.shape_cast %113 : vector<8xf32> to vector<8x1xf32>
    %115 = arith.addf %112, %114 : vector<8x1xf32>
    %c2_73 = arith.constant 2 : index
    %c0_74 = arith.constant 0 : index
    %c0_75 = arith.constant 0 : index
    %116 = vector.load %arg8[%c2_73, %c0_74, %c0_75] : memref<4x8x1xf32, #tpu.memory_space<vmem>>, vector<1x8x1xf32>
    %117 = vector.shape_cast %116 : vector<1x8x1xf32> to vector<8x1xf32>
    %118 = vector.shape_cast %115 : vector<8x1xf32> to vector<1x8x1xf32>
    tpu.vector_store %arg8[%c2_73, %c0_74, %c0_75], %118 {strides = array<i32>} : memref<4x8x1xf32, #tpu.memory_space<vmem>>, vector<1x8x1xf32>,
    %c2_76 = arith.constant 2 : index
    %c0_77 = arith.constant 0 : index
    %c0_78 = arith.constant 0 : index
    %119 = vector.load %arg9[%c2_76, %c0_77, %c0_78] : memref<4x8x8xf32, #tpu.memory_space<vmem>>, vector<1x8x8xf32>
    %120 = vector.shape_cast %119 : vector<1x8x8xf32> to vector<8x8xf32>
    %121 = vector.broadcast %106 : vector<8x1xf32> to vector<8x8xf32>
    %122 = arith.mulf %121, %120 : vector<8x8xf32>
    %cst_79 = arith.constant dense<0.000000e+00> : vector<8x8xf32>
    %123 = tpu.matmul %109, %92, %cst_79 {dimension_numbers = #tpu.dot_dimension_numbers<[1], [0], [0], [1], [0, 0, 1, 1], [], []>} : vector<8x12xf32>, vector<12x8xf32>, vector<8x8xf32> -> vector<8x8xf32>
    %124 = arith.addf %122, %123 : vector<8x8xf32>
    %c2_80 = arith.constant 2 : index
    %c0_81 = arith.constant 0 : index
    %c0_82 = arith.constant 0 : index
    %125 = vector.load %arg9[%c2_80, %c0_81, %c0_82] : memref<4x8x8xf32, #tpu.memory_space<vmem>>, vector<1x8x8xf32>
    %126 = vector.shape_cast %125 : vector<1x8x8xf32> to vector<8x8xf32>
    %127 = vector.shape_cast %124 : vector<8x8xf32> to vector<1x8x8xf32>
    tpu.vector_store %arg9[%c2_80, %c0_81, %c0_82], %127 {strides = array<i32>} : memref<4x8x8xf32, #tpu.memory_space<vmem>>, vector<1x8x8xf32>,
    %c2_83 = arith.constant 2 : index
    %c0_84 = arith.constant 0 : index
    %c0_85 = arith.constant 0 : index
    %128 = vector.load %arg7[%c2_83, %c0_84, %c0_85] : memref<4x8x1xf32, #tpu.memory_space<vmem>>, vector<1x8x1xf32>
    %129 = vector.shape_cast %128 : vector<1x8x1xf32> to vector<8x1xf32>
    %130 = vector.shape_cast %104 : vector<8x1xf32> to vector<1x8x1xf32>
    tpu.vector_store %arg7[%c2_83, %c0_84, %c0_85], %130 {strides = array<i32>} : memref<4x8x1xf32, #tpu.memory_space<vmem>>, vector<1x8x1xf32>,
    %c0_86 = arith.constant 0 : index
    %c0_87 = arith.constant 0 : index
    %c24 = arith.constant 24 : index
    %131 = vector.load %arg3[%c0_86, %c0_87, %c24] : memref<1x8x32xf32, #tpu.memory_space<vmem>>, vector<1x8x8xf32>
    %132 = vector.shape_cast %131 : vector<1x8x8xf32> to vector<8x8xf32>
    %cst_88 = arith.constant dense<0.000000e+00> : vector<8x12xf32>
    %133 = tpu.matmul %132, %90, %cst_88 {dimension_numbers = #tpu.dot_dimension_numbers<[1], [1], [0], [0], [0, 0, 1, 0], [], []>} : vector<8x8xf32>, vector<12x8xf32>, vector<8x12xf32> -> vector<8x12xf32>
    %cst_89 = arith.constant 0xFF800000 : f32
    %134 = vector.shape_cast %8 : vector<1x12xi1> to vector<1x12xi1>
    %135 = vector.broadcast %134 : vector<1x12xi1> to vector<8x12xi1>
    %136 = vector.broadcast %cst_89 : f32 to vector<8x12xf32>
    %137 = arith.select %135, %133, %136 : vector<8x12xi1>, vector<8x12xf32>
    %c3 = arith.constant 3 : index
    %c0_90 = arith.constant 0 : index
    %c0_91 = arith.constant 0 : index
    %138 = vector.load %arg7[%c3, %c0_90, %c0_91] : memref<4x8x1xf32, #tpu.memory_space<vmem>>, vector<1x8x1xf32>
    %139 = vector.shape_cast %138 : vector<1x8x1xf32> to vector<8x1xf32>
    %cst_92 = arith.constant dense<0xFF800000> : vector<8xf32>
    %140 = vector.multi_reduction <maximumf>, %137, %cst_92 [1] : vector<8x12xf32> to vector<8xf32>
    %141 = vector.shape_cast %140 : vector<8xf32> to vector<8x1xf32>
    %142 = arith.maximumf %139, %141 : vector<8x1xf32>
    %143 = arith.subf %139, %142 : vector<8x1xf32>
    %144 = math.exp %143 : vector<8x1xf32>
    %145 = vector.broadcast %142 : vector<8x1xf32> to vector<8x12xf32>
    %146 = arith.subf %137, %145 : vector<8x12xf32>
    %147 = math.exp %146 : vector<8x12xf32>
    %c3_93 = arith.constant 3 : index
    %c0_94 = arith.constant 0 : index
    %c0_95 = arith.constant 0 : index
    %148 = vector.load %arg8[%c3_93, %c0_94, %c0_95] : memref<4x8x1xf32, #tpu.memory_space<vmem>>, vector<1x8x1xf32>
    %149 = vector.shape_cast %148 : vector<1x8x1xf32> to vector<8x1xf32>
    %150 = arith.mulf %144, %149 : vector<8x1xf32>
    %cst_96 = arith.constant dense<0.000000e+00> : vector<8xf32>
    %151 = vector.multi_reduction <add>, %147, %cst_96 [1] : vector<8x12xf32> to vector<8xf32>
    %152 = vector.shape_cast %151 : vector<8xf32> to vector<8x1xf32>
    %153 = arith.addf %150, %152 : vector<8x1xf32>
    %c3_97 = arith.constant 3 : index
    %c0_98 = arith.constant 0 : index
    %c0_99 = arith.constant 0 : index
    %154 = vector.load %arg8[%c3_97, %c0_98, %c0_99] : memref<4x8x1xf32, #tpu.memory_space<vmem>>, vector<1x8x1xf32>
    %155 = vector.shape_cast %154 : vector<1x8x1xf32> to vector<8x1xf32>
    %156 = vector.shape_cast %153 : vector<8x1xf32> to vector<1x8x1xf32>
    tpu.vector_store %arg8[%c3_97, %c0_98, %c0_99], %156 {strides = array<i32>} : memref<4x8x1xf32, #tpu.memory_space<vmem>>, vector<1x8x1xf32>,
    %c3_100 = arith.constant 3 : index
    %c0_101 = arith.constant 0 : index
    %c0_102 = arith.constant 0 : index
    %157 = vector.load %arg9[%c3_100, %c0_101, %c0_102] : memref<4x8x8xf32, #tpu.memory_space<vmem>>, vector<1x8x8xf32>
    %158 = vector.shape_cast %157 : vector<1x8x8xf32> to vector<8x8xf32>
    %159 = vector.broadcast %144 : vector<8x1xf32> to vector<8x8xf32>
    %160 = arith.mulf %159, %158 : vector<8x8xf32>
    %cst_103 = arith.constant dense<0.000000e+00> : vector<8x8xf32>
    %161 = tpu.matmul %147, %92, %cst_103 {dimension_numbers = #tpu.dot_dimension_numbers<[1], [0], [0], [1], [0, 0, 1, 1], [], []>} : vector<8x12xf32>, vector<12x8xf32>, vector<8x8xf32> -> vector<8x8xf32>
    %162 = arith.addf %160, %161 : vector<8x8xf32>
    %c3_104 = arith.constant 3 : index
    %c0_105 = arith.constant 0 : index
    %c0_106 = arith.constant 0 : index
    %163 = vector.load %arg9[%c3_104, %c0_105, %c0_106] : memref<4x8x8xf32, #tpu.memory_space<vmem>>, vector<1x8x8xf32>
    %164 = vector.shape_cast %163 : vector<1x8x8xf32> to vector<8x8xf32>
    %165 = vector.shape_cast %162 : vector<8x8xf32> to vector<1x8x8xf32>
    tpu.vector_store %arg9[%c3_104, %c0_105, %c0_106], %165 {strides = array<i32>} : memref<4x8x8xf32, #tpu.memory_space<vmem>>, vector<1x8x8xf32>,
    %c3_107 = arith.constant 3 : index
    %c0_108 = arith.constant 0 : index
    %c0_109 = arith.constant 0 : index
    %166 = vector.load %arg7[%c3_107, %c0_108, %c0_109] : memref<4x8x1xf32, #tpu.memory_space<vmem>>, vector<1x8x1xf32>
    %167 = vector.shape_cast %166 : vector<1x8x1xf32> to vector<8x1xf32>
    %168 = vector.shape_cast %142 : vector<8x1xf32> to vector<1x8x1xf32>
    tpu.vector_store %arg7[%c3_107, %c0_108, %c0_109], %168 {strides = array<i32>} : memref<4x8x1xf32, #tpu.memory_space<vmem>>, vector<1x8x1xf32>,
    %c0_i32_110 = arith.constant 0 : i32
    %169 = arith.cmpi eq, %arg2, %c0_i32_110 : i32
    %170 = arith.extui %169 : i1 to i32
    %c0_i32_111 = arith.constant 0 : i32
    %171 = arith.cmpi ne, %170, %c0_i32_111 : i32
    scf.if %171 {
      %c0_112 = arith.constant 0 : index
      %c0_113 = arith.constant 0 : index
      %c0_114 = arith.constant 0 : index
      %172 = vector.load %arg8[%c0_112, %c0_113, %c0_114] : memref<4x8x1xf32, #tpu.memory_space<vmem>>, vector<1x8x1xf32>
      %173 = vector.shape_cast %172 : vector<1x8x1xf32> to vector<8x1xf32>
      %174 = tpu.reciprocal %173 : vector<8x1xf32> -> vector<8x1xf32>
      %c0_115 = arith.constant 0 : index
      %c0_116 = arith.constant 0 : index
      %c0_117 = arith.constant 0 : index
      %175 = vector.load %arg9[%c0_115, %c0_116, %c0_117] : memref<4x8x8xf32, #tpu.memory_space<vmem>>, vector<1x8x8xf32>
      %176 = vector.shape_cast %175 : vector<1x8x8xf32> to vector<8x8xf32>
      %177 = vector.broadcast %174 : vector<8x1xf32> to vector<8x8xf32>
      %178 = arith.mulf %176, %177 : vector<8x8xf32>
      %c0_118 = arith.constant 0 : index
      %c0_119 = arith.constant 0 : index
      %c0_120 = arith.constant 0 : index
      %179 = vector.load %arg6[%c0_118, %c0_119, %c0_120] : memref<1x8x32xf32, #tpu.memory_space<vmem>>, vector<1x8x8xf32>
      %180 = vector.shape_cast %179 : vector<1x8x8xf32> to vector<8x8xf32>
      %181 = vector.shape_cast %178 : vector<8x8xf32> to vector<1x8x8xf32>
      tpu.vector_store %arg6[%c0_118, %c0_119, %c0_120], %181 {strides = array<i32>} : memref<1x8x32xf32, #tpu.memory_space<vmem>>, vector<1x8x8xf32>,
      %c1_121 = arith.constant 1 : index
      %c0_122 = arith.constant 0 : index
      %c0_123 = arith.constant 0 : index
      %182 = vector.load %arg8[%c1_121, %c0_122, %c0_123] : memref<4x8x1xf32, #tpu.memory_space<vmem>>, vector<1x8x1xf32>
      %183 = vector.shape_cast %182 : vector<1x8x1xf32> to vector<8x1xf32>
      %184 = tpu.reciprocal %183 : vector<8x1xf32> -> vector<8x1xf32>
      %c1_124 = arith.constant 1 : index
      %c0_125 = arith.constant 0 : index
      %c0_126 = arith.constant 0 : index
      %185 = vector.load %arg9[%c1_124, %c0_125, %c0_126] : memref<4x8x8xf32, #tpu.memory_space<vmem>>, vector<1x8x8xf32>
      %186 = vector.shape_cast %185 : vector<1x8x8xf32> to vector<8x8xf32>
      %187 = vector.broadcast %184 : vector<8x1xf32> to vector<8x8xf32>
      %188 = arith.mulf %186, %187 : vector<8x8xf32>
      %c0_127 = arith.constant 0 : index
      %c0_128 = arith.constant 0 : index
      %c8_129 = arith.constant 8 : index
      %189 = vector.load %arg6[%c0_127, %c0_128, %c8_129] : memref<1x8x32xf32, #tpu.memory_space<vmem>>, vector<1x8x8xf32>
      %190 = vector.shape_cast %189 : vector<1x8x8xf32> to vector<8x8xf32>
      %191 = vector.shape_cast %188 : vector<8x8xf32> to vector<1x8x8xf32>
      tpu.vector_store %arg6[%c0_127, %c0_128, %c8_129], %191 {strides = array<i32>} : memref<1x8x32xf32, #tpu.memory_space<vmem>>, vector<1x8x8xf32>,
      %c2_130 = arith.constant 2 : index
      %c0_131 = arith.constant 0 : index
      %c0_132 = arith.constant 0 : index
      %192 = vector.load %arg8[%c2_130, %c0_131, %c0_132] : memref<4x8x1xf32, #tpu.memory_space<vmem>>, vector<1x8x1xf32>
      %193 = vector.shape_cast %192 : vector<1x8x1xf32> to vector<8x1xf32>
      %194 = tpu.reciprocal %193 : vector<8x1xf32> -> vector<8x1xf32>
      %c2_133 = arith.constant 2 : index
      %c0_134 = arith.constant 0 : index
      %c0_135 = arith.constant 0 : index
      %195 = vector.load %arg9[%c2_133, %c0_134, %c0_135] : memref<4x8x8xf32, #tpu.memory_space<vmem>>, vector<1x8x8xf32>
      %196 = vector.shape_cast %195 : vector<1x8x8xf32> to vector<8x8xf32>
      %197 = vector.broadcast %194 : vector<8x1xf32> to vector<8x8xf32>
      %198 = arith.mulf %196, %197 : vector<8x8xf32>
      %c0_136 = arith.constant 0 : index
      %c0_137 = arith.constant 0 : index
      %c16_138 = arith.constant 16 : index
      %199 = vector.load %arg6[%c0_136, %c0_137, %c16_138] : memref<1x8x32xf32, #tpu.memory_space<vmem>>, vector<1x8x8xf32>
      %200 = vector.shape_cast %199 : vector<1x8x8xf32> to vector<8x8xf32>
      %201 = vector.shape_cast %198 : vector<8x8xf32> to vector<1x8x8xf32>
      tpu.vector_store %arg6[%c0_136, %c0_137, %c16_138], %201 {strides = array<i32>} : memref<1x8x32xf32, #tpu.memory_space<vmem>>, vector<1x8x8xf32>,
      %c3_139 = arith.constant 3 : index
      %c0_140 = arith.constant 0 : index
      %c0_141 = arith.constant 0 : index
      %202 = vector.load %arg8[%c3_139, %c0_140, %c0_141] : memref<4x8x1xf32, #tpu.memory_space<vmem>>, vector<1x8x1xf32>
      %203 = vector.shape_cast %202 : vector<1x8x1xf32> to vector<8x1xf32>
      %204 = tpu.reciprocal %203 : vector<8x1xf32> -> vector<8x1xf32>
      %c3_142 = arith.constant 3 : index
      %c0_143 = arith.constant 0 : index
      %c0_144 = arith.constant 0 : index
      %205 = vector.load %arg9[%c3_142, %c0_143, %c0_144] : memref<4x8x8xf32, #tpu.memory_space<vmem>>, vector<1x8x8xf32>
      %206 = vector.shape_cast %205 : vector<1x8x8xf32> to vector<8x8xf32>
      %207 = vector.broadcast %204 : vector<8x1xf32> to vector<8x8xf32>
      %208 = arith.mulf %206, %207 : vector<8x8xf32>
      %c0_145 = arith.constant 0 : index
      %c0_146 = arith.constant 0 : index
      %c24_147 = arith.constant 24 : index
      %209 = vector.load %arg6[%c0_145, %c0_146, %c24_147] : memref<1x8x32xf32, #tpu.memory_space<vmem>>, vector<1x8x8xf32>
      %210 = vector.shape_cast %209 : vector<1x8x8xf32> to vector<8x8xf32>
      %211 = vector.shape_cast %208 : vector<8x8xf32> to vector<1x8x8xf32>
      tpu.vector_store %arg6[%c0_145, %c0_146, %c24_147], %211 {strides = array<i32>} : memref<1x8x32xf32, #tpu.memory_space<vmem>>, vector<1x8x8xf32>,
    } else {
    }
    return
  }
  func.func @transform_0(%arg0: i32, %arg1: i32, %arg2: i32) -> (i32, i32, i32) {
    %c0_i32 = arith.constant 0 : i32
    %c0_i32_0 = arith.constant 0 : i32
    return %arg0, %arg1, %c0_i32 : i32, i32, i32
  }
  func.func @transform_1(%arg0: i32, %arg1: i32, %arg2: i32) -> (i32, i32, i32) {
    %c0_i32 = arith.constant 0 : i32
    %c0_i32_0 = arith.constant 0 : i32
    return %arg0, %arg2, %c0_i32 : i32, i32, i32
  }
  func.func @transform_2(%arg0: i32, %arg1: i32, %arg2: i32) -> (i32, i32, i32) {
    %c0_i32 = arith.constant 0 : i32
    %c0_i32_0 = arith.constant 0 : i32
    return %arg0, %arg2, %c0_i32 : i32, i32, i32
  }
  func.func @transform_3(%arg0: i32, %arg1: i32, %arg2: i32) -> (i32, i32, i32) {
    %c0_i32 = arith.constant 0 : i32
    %c0_i32_0 = arith.constant 0 : i32
    return %arg0, %arg1, %c0_i32 : i32, i32, i32
  }
}

module attributes {stable_mosaic.version = 11 : i64} {
  func.func @_matmul_kernel(%arg0: i32, %arg1: i32, %arg2: i32, %arg3: memref<16x32xf32, #tpu.memory_space<vmem>>, %arg4: memref<32x32xf32, #tpu.memory_space<vmem>>, %arg5: memref<16x32xf32, #tpu.memory_space<vmem>>, %arg6: memref<16x32xf32, #tpu.memory_space<vmem>>) attributes {dimension_semantics = [#tpu.dimension_semantics<parallel>, #tpu.dimension_semantics<parallel>, #tpu.dimension_semantics<arbitrary>], iteration_bounds = array<i64: 1, 1, 1>, scalar_prefetch = 0 : i64, scratch_operands = 1 : i64, tpu.core_type = #tpu.core_type<tc>, window_params = [{transform_indices = @transform_0, window_bounds = array<i64: 16, 32>}, {transform_indices = @transform_1, window_bounds = array<i64: 32, 32>}, {transform_indices = @transform_2, window_bounds = array<i64: 16, 32>}]} {
    %c0_i32 = arith.constant 0 : i32
    %0 = arith.cmpi eq, %arg2, %c0_i32 : i32
    %1 = arith.extui %0 : i1 to i32
    %c0_i32_0 = arith.constant 0 : i32
    %2 = arith.cmpi ne, %1, %c0_i32_0 : i32
    scf.if %2 {
      %cst_10 = arith.constant 0.000000e+00 : f32
      %12 = vector.broadcast %cst_10 : f32 to vector<16x32xf32>
      %c0_11 = arith.constant 0 : index
      %c0_12 = arith.constant 0 : index
      %13 = vector.load %arg6[%c0_11, %c0_12] : memref<16x32xf32, #tpu.memory_space<vmem>>, vector<16x32xf32>
      tpu.vector_store %arg6[%c0_11, %c0_12], %12 {strides = array<i32>} : memref<16x32xf32, #tpu.memory_space<vmem>>, vector<16x32xf32>,
    } else {
    }
    %c0 = arith.constant 0 : index
    %c0_1 = arith.constant 0 : index
    %3 = vector.load %arg6[%c0, %c0_1] : memref<16x32xf32, #tpu.memory_space<vmem>>, vector<16x32xf32>
    %c0_2 = arith.constant 0 : index
    %c0_3 = arith.constant 0 : index
    %4 = vector.load %arg3[%c0_2, %c0_3] : memref<16x32xf32, #tpu.memory_space<vmem>>, vector<16x32xf32>
    %c0_4 = arith.constant 0 : index
    %c0_5 = arith.constant 0 : index
    %5 = vector.load %arg4[%c0_4, %c0_5] : memref<32x32xf32, #tpu.memory_space<vmem>>, vector<32x32xf32>
    %cst = arith.constant dense<0.000000e+00> : vector<16x32xf32>
    %6 = tpu.matmul %4, %5, %cst {dimension_numbers = #tpu.dot_dimension_numbers<[1], [0], [0], [1], [0, 0, 1, 1], [], []>} : vector<16x32xf32>, vector<32x32xf32>, vector<16x32xf32> -> vector<16x32xf32>
    %7 = arith.addf %3, %6 : vector<16x32xf32>
    %c0_6 = arith.constant 0 : index
    %c0_7 = arith.constant 0 : index
    %8 = vector.load %arg6[%c0_6, %c0_7] : memref<16x32xf32, #tpu.memory_space<vmem>>, vector<16x32xf32>
    tpu.vector_store %arg6[%c0_6, %c0_7], %7 {strides = array<i32>} : memref<16x32xf32, #tpu.memory_space<vmem>>, vector<16x32xf32>,
    %c0_i32_8 = arith.constant 0 : i32
    %9 = arith.cmpi eq, %arg2, %c0_i32_8 : i32
    %10 = arith.extui %9 : i1 to i32
    %c0_i32_9 = arith.constant 0 : i32
    %11 = arith.cmpi ne, %10, %c0_i32_9 : i32
    scf.if %11 {
      %c0_10 = arith.constant 0 : index
      %c0_11 = arith.constant 0 : index
      %12 = vector.load %arg6[%c0_10, %c0_11] : memref<16x32xf32, #tpu.memory_space<vmem>>, vector<16x32xf32>
      %c0_12 = arith.constant 0 : index
      %c0_13 = arith.constant 0 : index
      %13 = vector.load %arg5[%c0_12, %c0_13] : memref<16x32xf32, #tpu.memory_space<vmem>>, vector<16x32xf32>
      tpu.vector_store %arg5[%c0_12, %c0_13], %12 {strides = array<i32>} : memref<16x32xf32, #tpu.memory_space<vmem>>, vector<16x32xf32>,
    } else {
    }
    return
  }
  func.func @transform_0(%arg0: i32, %arg1: i32, %arg2: i32) -> (i32, i32) {
    %c0_i32 = arith.constant 0 : i32
    return %arg0, %arg2 : i32, i32
  }
  func.func @transform_1(%arg0: i32, %arg1: i32, %arg2: i32) -> (i32, i32) {
    %c0_i32 = arith.constant 0 : i32
    return %arg2, %arg1 : i32, i32
  }
  func.func @transform_2(%arg0: i32, %arg1: i32, %arg2: i32) -> (i32, i32) {
    %c0_i32 = arith.constant 0 : i32
    return %arg0, %arg1 : i32, i32
  }
}

</mosaic_0001>

<bundles_post_ra>
// kernel: self_attention_forward.4
= control target key start
LH: loop header
LB: loop body
LE: loop exit
PB: predicated region body
PF: predicated region fallthrough
CT: control target
= control target key end

     0   :  { %7 = vsyncpa [#allocation4], 0  ;;  %s194_s9 = smov [#allocation3]   ;;  %s243_s0 = inlined_call_operand.vmem [shape: f32[16,32], index: 0, kind: input, shape index: {}]   ;;  %s244_s1 = inlined_call_operand.hbm [shape: f32[32,64], index: 1, kind: input, shape index: {}]   ;;  %s245_s2 = inlined_call_operand.vmem [shape: f32[16,64], index: 2, kind: output, shape index: {}]  }
   0x1   :  { %s15_s10 = sshll.u32 %s194_s9, 4  ;;  %s170_s13 = scalar_lea.hbm %s244_s1, 512  ;;  %s16_s10 = int_to_ptr.vmem [resolvable:$true] %s15_s10 }
   0x2   :  { %p171_p0 = scmp.ne.s32.totalorder %s244_s1, %s170_s13  ;;  %p174_p1 = scmp.lt.u32.totalorder %s170_s13, %s244_s1 }
   0x4   :  { %p176_p2 = pnand %p174_p1, %p171_p0 }
   0x6   :  { %179 = shalt.err (!%p176_p2)
}
   0x7   :  { %s180_s18 = scalar_lea.vmem %s16_s10, 512  ;;  %p185_p4 = scmp.lt.s32.totalorder %s16_s10, %s16_s10 }
   0x8   :  { %p181_p3 = scmp.ne.s32.totalorder %s16_s10, %s180_s18  ;;  %p186_p5 = scmp.lt.s32.totalorder %s180_s18, %s180_s18 }
   0xa   :  { %p187_p6 = por %p186_p5, %p185_p4 }
   0xc   :  { %p188_p7 = pnand %p187_p6, %p181_p3 }
   0xe   :  { %191 = shalt.err (!%p188_p7)
}
   0xf   :  { %s195_s19 = smov 128   ;;  %s196_s20 = smov 8  }
  0x10   :  { %21 = dma.hbm_to_vmem [thread:$0]  %s244_s1, 512, %s16_s10, [#allocation4], %s195_s19, %s195_s19, %s196_s20  }
  0x11   :  { %192 = dma.done.wait [#allocation4], 512  }
  0x12   :  { %193 = vsyncadd [#allocation4], 4294966784  ;;  %vm29_vm0 = vcmask 523264   ;;  %v197_v0 = vmov 0.0   ;;  %vm40_vm1 = vcmask 261120   ;;  %v36_v1 = vld [vmem:[#allocation3] sm:$0xff] }
  0x13   :  { %31 = vst.msk [vmem:[#allocation2 + $0x8] sm:$0xff] %vm29_vm0, %v197_v0  ;;  %30 = vst.msk [vmem:[#allocation2] sm:$0xff] %vm29_vm0, %v197_v0  ;;  %v37_v2 = vld [vmem:[#allocation3 + $0x8] sm:$0xff]  ;;  %v38_v3 = vld [vmem:[#allocation3 + $0x10] sm:$0xff] }
  0x14   :  { %v158_v4 = vpack.c.bf16 %v37_v2, %v36_v1  ;;  %v39_v5 = vld [vmem:[#allocation3 + $0x18] sm:$0xff]  ;;  %v34_v6 = vld [vmem:[%s243_s0] sm:$0xff] }
  0x15   :  { %v162_v7 = vpack.c.bf16 %v39_v5, %v38_v3  ;;  %155 = vmatprep.mubr.msk.f32.mxu0 %vm40_vm1, %v34_v6  ;;  %v35_v8 = vld [vmem:[%s243_s0 + $0x8] sm:$0xff] }
  0x16   :  { %159 = vmatprep.subr.bf16.mxu0 %v158_v4 }
  0x17   :  { %161 = vmatpush3.bf16.msra.mxu0 %v158_v4 }
  0x18   :  { %163 = vmatprep.subr.bf16.mxu0 %v162_v7 }
  0x1a   :  { %v33_v9 = vld [vmem:[#allocation2 + $0x8] sm:$0xff]  ;;  %v32_v10 = vld [vmem:[#allocation2] sm:$0xff] }
  0x1b   :  { %165 = vmatpush3.bf16.msra.mxu0 %v162_v7 }
  0x1e   :  { %156 = vmatmul.mubr.msk.f32.vlgmr.msra.gmra.mrb[0].mxu0 %vm40_vm1, %v35_v8 }
  0xf1   :  { %v157_v11 = vpop.f32.mrb[0].mxu0 }
  0xf2   :  { %v123_v12 = vadd.f32 %v157_v11, %v33_v9  ;;  %v113_v13 = vpop.f32.mrb[1].mxu0 }
  0xf3   :  { %v122_v14 = vadd.f32 %v113_v13, %v32_v10 }
  0xf4   :  { %126 = vst.msk [vmem:[#allocation2 + $0x8] sm:$0xff] %vm29_vm0, %v123_v12 }
  0xf5   :  { %125 = vst.msk [vmem:[#allocation2] sm:$0xff] %vm29_vm0, %v122_v14 }
  0xfb   :  { %v131_v15 = vld [vmem:[#allocation2 + $0x8] sm:$0xff] }
  0xfc   :  { %133 = vst.msk [vmem:[%s245_s2 + $0x8] sm:$0xff] %vm29_vm0, %v131_v15  ;;  %v130_v16 = vld [vmem:[#allocation2] sm:$0xff] }
  0xfd   :  { %132 = vst.msk [vmem:[%s245_s2] sm:$0xff] %vm29_vm0, %v130_v16 }
  0xfe   :  { %138 = vsyncpa [#allocation4], 1 }

// kernel: self_attention_forward.5
= control target key start
LH: loop header
LB: loop body
LE: loop exit
PB: predicated region body
PF: predicated region fallthrough
CT: control target
= control target key end

     0   :  { %s597_s18 = smov 0   ;;  %s599_s19 = smov 0   ;;  %s639_s0 = inlined_call_operand.vmem [shape: f32[2,8,24], index: 0, kind: input, shape index: {}]   ;;  %s640_s1 = inlined_call_operand.vmem [shape: f32[2,8,24], index: 1, kind: input, shape index: {}]   ;;  %s641_s2 = inlined_call_operand.vmem [shape: f32[8,24], index: 2, kind: input, shape index: {}]   ;;  %s642_s3 = inlined_call_operand.vmem [shape: f32[8,24], index: 3, kind: input, shape index: {}]   ;;  %s643_s4 = inlined_call_operand.vmem [shape: f32[2,8,24], index: 4, kind: output, shape index: {0}]   ;;  %s644_s5 = inlined_call_operand.vmem [shape: f32[2,8,24], index: 5, kind: output, shape index: {1}]  }
   0x1   :  { %s601_s20 = smov 0  }
   0x2 LB: > { %s28_s21 = sadd.s32 1, %s561_s19  ;;  %p512_p0 = scmp.ge.s32.totalorder %s565_s20, 1  ;;  %s565_s20 = sphi %s601_s20, %s16_s20   ;;  %s561_s19 = sphi %s599_s19, %s646_s19   ;;  %s557_s18 = sphi %s597_s18, %s645_s18  }
   0x3   : > { %p30_p1 = scmp.ge.s32.totalorder %s28_s21, 2  ;;  %p242_p2 = scmp.lt.s32.totalorder %s565_s20, 3 }
   0x5   : > { %s648_s21 = smov (%p30_p1, %s28_s21), 0  ;;  %p243_p3 = pnand %p512_p0, %p242_p2 }
   0x6   : > { %p296_p4 = scmp.lt.s32.totalorder (!%p243_p3), %s557_s18, 1  ;;  %v334_v0 = vld [vmem:[%s641_s2] sm:$0xff] (!%p243_p3)  ;;  %vm339_vm0 = vcmask (!%p243_p3), 195584  }
   0x7   : > { %246 = sbr.rel (%p243_p3) target bundleno = 24 (0x18), region = 36  ;;  %v335_v1 = vld [vmem:[%s642_s3] sm:$0xff] (!%p243_p3) }
   0xe   : > { %s650_s18 = smov (!%p296_p4, %s557_s18), 1 }
   0xf   : > { %s513_s22 = sshll.u32 %s650_s18, 3 }
  0x10   : > { %s302_s29 = scalar_lea.vmem %s639_s0, %s513_s22  ;;  %s309_s7 = scalar_lea.vmem %s640_s1, %s513_s22 }
  0x11   : > { %v332_v2 = vld [vmem:[%s302_s29] sm:$0xff]  ;;  %s324_s10 = scalar_lea.vmem %s643_s4, %s513_s22  ;;  %s331_s13 = scalar_lea.vmem %s644_s5, %s513_s22 }
  0x12   : > { %v333_v3 = vld [vmem:[%s309_s7] sm:$0xff]  ;;  %v336_v4 = vmul.f32 %v334_v0, %v332_v2  ;;  %v341_v6 = vmul.f32 %v335_v1, %v332_v2 }
  0x13   : > { %v337_v5 = vmul.f32 %v335_v1, %v333_v3  ;;  %v342_v7 = vmul.f32 %v334_v0, %v333_v3 }
  0x15   : > { %v338_v8 = vsub.f32 %v336_v4, %v337_v5  ;;  %v343_v9 = vadd.f32 %v342_v7, %v341_v6 }
  0x17   : > { %340 = vst.msk [vmem:[%s324_s10] sm:$0xff] %vm339_vm0, %v338_v8  ;;  %344 = vst.msk [vmem:[%s331_s13] sm:$0xff] %vm339_vm0, %v343_v9 }
  0x18 PF: > { %s16_s20 = sadd.s32 1, %s565_s20   ;;  %s645_s18 = smov %s561_s19 }
  0x19   : > { %p13_p5 = scmp.ge.s32.totalorder %s16_s20, 4   ;;  %s646_s19 = smov %s648_s21 }
  0x1b   :  { %15 = sbr.rel (!%p13_p5) target bundleno = 2 (0x2), region = 87 }

// kernel: self_attention_forward.7
= control target key start
LH: loop header
LB: loop body
LE: loop exit
PB: predicated region body
PF: predicated region fallthrough
CT: control target
= control target key end

     0   :  { %vm16_vm0 = vcmask 261120   ;;  %v191_v6 = vmov 0.0   ;;  %s248_s0 = inlined_call_operand.vmem [shape: f32[16,32], index: 0, kind: input, shape index: {}]   ;;  %s249_s1 = inlined_call_operand.vmem [shape: f32[32,32], index: 1, kind: input, shape index: {}]   ;;  %s250_s2 = inlined_call_operand.hbm [shape: f32[16,32], index: 2, kind: output, shape index: {}]  }
   0x1   :  { %v23_v0 = vld [vmem:[%s249_s1] sm:$0xff]  ;;  %v24_v1 = vld [vmem:[%s249_s1 + $0x8] sm:$0xff]  ;;  %v25_v2 = vld [vmem:[%s249_s1 + $0x10] sm:$0xff]  ;;  %18 = vst.msk [vmem:[#allocation2 + $0x8] sm:$0xff] %vm16_vm0, %v191_v6 }
   0x2   :  { %v155_v3 = vpack.c.bf16 %v24_v1, %v23_v0  ;;  %v26_v4 = vld [vmem:[%s249_s1 + $0x18] sm:$0xff]  ;;  %v21_v5 = vld [vmem:[%s248_s0] sm:$0xff]  ;;  %17 = vst.msk [vmem:[#allocation2] sm:$0xff] %vm16_vm0, %v191_v6 }
   0x3   :  { %v159_v7 = vpack.c.bf16 %v26_v4, %v25_v2  ;;  %152 = vmatprep.mubr.msk.f32.mxu0 %vm16_vm0, %v21_v5 }
   0x4   :  { %7 = vsyncpa [#allocation4], 0  ;;  %156 = vmatprep.subr.bf16.mxu0 %v155_v3  ;;  %v22_v8 = vld [vmem:[%s248_s0 + $0x8] sm:$0xff]  ;;  %s192_s1 = smov [#allocation3]  }
   0x5   :  { %158 = vmatpush3.bf16.msra.mxu0 %v155_v3  ;;  %s125_s21 = sshll.u32 %s192_s1, 4  ;;  %s126_s21 = int_to_ptr.vmem [resolvable:$true] %s125_s21 }
   0x6   :  { %160 = vmatprep.subr.bf16.mxu0 %v159_v7  ;;  %s167_s0 = scalar_lea.vmem %s126_s21, 256  ;;  %p172_p1 = scmp.lt.s32.totalorder %s126_s21, %s126_s21 }
   0x7   :  { %p168_p0 = scmp.ne.s32.totalorder %s126_s21, %s167_s0  ;;  %p173_p2 = scmp.lt.s32.totalorder %s167_s0, %s167_s0 }
   0x8   :  { %v20_v9 = vld [vmem:[#allocation2 + $0x8] sm:$0xff] }
   0x9   :  { %162 = vmatpush3.bf16.msra.mxu0 %v159_v7  ;;  %v19_v10 = vld [vmem:[#allocation2] sm:$0xff]  ;;  %p174_p3 = por %p173_p2, %p172_p1 }
   0xb   :  { %p175_p4 = pnand %p174_p3, %p168_p0 }
   0xc   :  { %153 = vmatmul.mubr.msk.f32.vlgmr.msra.gmra.mrb[0].mxu0 %vm16_vm0, %v22_v8 }
  0xdf   :  { %v154_v11 = vpop.f32.mrb[0].mxu0 }
  0xe0   :  { %v110_v12 = vadd.f32 %v154_v11, %v20_v9  ;;  %v100_v13 = vpop.f32.mrb[1].mxu0 }
  0xe1   :  { %v109_v14 = vadd.f32 %v100_v13, %v19_v10 }
  0xe2   :  { %112 = vst.msk [vmem:[#allocation2 + $0x8] sm:$0xff] %vm16_vm0, %v110_v12 }
  0xe3   :  { %111 = vst.msk [vmem:[#allocation2] sm:$0xff] %vm16_vm0, %v109_v14 }
  0xe9   :  { %v117_v15 = vld [vmem:[#allocation2 + $0x8] sm:$0xff] }
  0xea   :  { %v116_v16 = vld [vmem:[#allocation2] sm:$0xff]  ;;  %119 = vst.msk [vmem:[#allocation3 + $0x8] sm:$0xff] %vm16_vm0, %v117_v15 }
  0xeb   :  { %118 = vst.msk [vmem:[#allocation3] sm:$0xff] %vm16_vm0, %v116_v16 }
  0xec   :  { %178 = shalt.err (!%p175_p4)
}
  0xed   :  { %s179_s24 = scalar_lea.hbm %s250_s2, 256 }
  0xee   :  { %p180_p5 = scmp.ne.s32.totalorder %s250_s2, %s179_s24  ;;  %p183_p6 = scmp.lt.u32.totalorder %s179_s24, %s250_s2 }
  0xf0   :  { %p185_p7 = pnand %p183_p6, %p180_p5 }
  0xf2   :  { %188 = shalt.err (!%p185_p7)
}
  0xf3   :  { %s193_s29 = smov 128   ;;  %s194_s30 = smov 8  }
  0xf4   :  { %131 = dma.vmem_to_hbm [thread:$0]  %s126_s21, 256, %s250_s2, [#allocation4], %s193_s29, %s193_s29, %s194_s30  }
  0xf5   :  { %189 = dma.done.wait [#allocation4], 256  }
  0xf6   :  { %190 = vsyncadd [#allocation4], 4294967040 }
  0xf7   :  { %135 = vsyncpa [#allocation4], 1 }

// kernel: self_attention_forward.6
= control target key start
LH: loop header
LB: loop body
LE: loop exit
PB: predicated region body
PF: predicated region fallthrough
CT: control target
= control target key end

     0   :  { %s1527_s12 = smov 0   ;;  %s1529_s13 = smov 0   ;;  %s1761_s0 = inlined_call_operand.vmem [shape: f32[2,8,32], index: 0, kind: input, shape index: {}]   ;;  %s1762_s1 = inlined_call_operand.vmem [shape: f32[2,12,16], index: 1, kind: input, shape index: {}]   ;;  %s1763_s2 = inlined_call_operand.vmem [shape: f32[2,12,16], index: 2, kind: input, shape index: {}]   ;;  %s1764_s3 = inlined_call_operand.vmem [shape: f32[2,8,32], index: 3, kind: output, shape index: {}]  }
   0x1   :  { %s1531_s14 = smov 0  }
   0x2 LB: > { %s32_s15 = sadd.s32 1, %s1489_s13  ;;  %p1256_p0 = scmp.ge.s32.totalorder %s1493_s14, 1  ;;  %s1493_s14 = sphi %s1531_s14, %s13_s14   ;;  %s1489_s13 = sphi %s1529_s13, %s1770_s13   ;;  %s1485_s12 = sphi %s1527_s12, %s1769_s12  }
   0x3   : > { %p34_p1 = scmp.ge.s32.totalorder %s32_s15, 2  ;;  %p196_p2 = scmp.lt.s32.totalorder %s1493_s14, 3 }
   0x5   : > { %s1772_s15 = smov (%p34_p1, %s32_s15), 0  ;;  %p197_p3 = pnand %p1256_p0, %p196_p2 }
   0x6   : > { %p242_p4 = scmp.lt.s32.totalorder (!%p197_p3), %s1485_s12, 1  ;;  %vm289_vm0 = vcmask (!%p197_p3), 64512   ;;  %v1495_v0 = vmov (!%p197_p3), 0.0|0.0   ;;  %vm1496_vm1 = vmmov (!%p197_p3), 0   ;;  %v1497_v1 = vmov (!%p197_p3), 0.0   ;;  %s1500_s24 = smov (!%p197_p3), 120  }
   0x7   : > { %200 = sbr.rel (%p197_p3) target bundleno = 2466 (0x9a2), region = 32  ;;  %1367 = vmatprep.subr.bf16.mxu0 (!%p197_p3), %v1495_v0  ;;  %1315 = vmatprep.mubr.msk.f32.mxu0 (!%p197_p3), %vm1496_vm1, %v1497_v1  ;;  %290 = vst.msk [vmem:[#allocation4] sm:$0xff] (!%p197_p3), %vm289_vm0, %v1497_v1  ;;  %291 = vst.msk [vmem:[#allocation4 + $0x8] sm:$0xff] (!%p197_p3), %vm289_vm0, %v1497_v1  ;;  %vm280_vm3 = vcmask (!%p197_p3), 7168   ;;  %v1498_v7 = vmov (!%p197_p3), -inf   ;;  %v295_v8 = vlaneseq (!%p197_p3)  ;;  %vm389_vm5 = vcmask (!%p197_p3), 97280  }
   0x8   : > { %292 = vst.msk [vmem:[#allocation4 + $0x10] sm:$0xff] (!%p197_p3), %vm289_vm0, %v1497_v1  ;;  %293 = vst.msk [vmem:[#allocation4 + $0x18] sm:$0xff] (!%p197_p3), %vm289_vm0, %v1497_v1  ;;  %1371 = vmatprep.subr.bf16.mxu1 (!%p197_p3), %v1495_v0  ;;  %1322 = vmatprep.mubr.msk.f32.mxu1 (!%p197_p3), %vm1496_vm1, %v1497_v1  ;;  %v1499_v14 = vmov (!%p197_p3), 0   ;;  %vm423_vm6 = vcmask (!%p197_p3), 1043456   ;;  %vm1501_vm7 = vmmov (!%p197_p3), 1   ;;  %s1502_s28 = smov (!%p197_p3), 112  }
   0x9   : > { %vm1575_vm2 = vmpackc.low (!%p197_p3), %vm289_vm0, %vm289_vm0  ;;  %281 = vst.msk [vmem:[#allocation2] sm:$0xff] (!%p197_p3), %vm280_vm3, %v1498_v7  ;;  %v1607_v9 = vand.u32 (!%p197_p3), 127, %v295_v8  ;;  %1435 = vset.pattern.permute.xlu0 (!%p197_p3), %v1499_v14  ;;  %1436 = vset.pattern.permute.xlu1 (!%p197_p3), %v1499_v14  ;;  %s1503_s29 = smov (!%p197_p3), 104   ;;  %s1504_s30 = smov (!%p197_p3), 8   ;;  %vm1107_vm9 = vcmask (!%p197_p3), 130112   ;;  %vm1122_vm10 = vcmask (!%p197_p3), 195712  }
   0xa   : > { %282 = vst.msk [vmem:[#allocation2 + $0x8] sm:$0xff] (!%p197_p3), %vm280_vm3, %v1498_v7  ;;  %283 = vst.msk [vmem:[#allocation2 + $0x10] sm:$0xff] (!%p197_p3), %vm280_vm3, %v1498_v7  ;;  %s1505_s4 = smov (!%p197_p3), 16   ;;  %s1506_s5 = smov (!%p197_p3), 24   ;;  %vm1137_vm11 = vcmask (!%p197_p3), 261312  }
   0xb   : > { %284 = vst.msk [vmem:[#allocation2 + $0x18] sm:$0xff] (!%p197_p3), %vm280_vm3, %v1498_v7  ;;  %285 = vst.msk [vmem:[#allocation3] sm:$0xff] (!%p197_p3), %vm280_vm3, %v1497_v1  ;;  %vm299_vm4 = vcmp.lt.s32.totalorder (!%p197_p3), %v1607_v9, 12 }
   0xc   : > { %286 = vst.msk [vmem:[#allocation3 + $0x8] sm:$0xff] (!%p197_p3), %vm280_vm3, %v1497_v1  ;;  %287 = vst.msk [vmem:[#allocation3 + $0x10] sm:$0xff] (!%p197_p3), %vm280_vm3, %v1497_v1 }
   0xd   : > { %288 = vst.msk [vmem:[#allocation3 + $0x18] sm:$0xff] (!%p197_p3), %vm280_vm3, %v1497_v1  ;;  %vm1637_vm8 = vmpackc.low (!%p197_p3), %vm423_vm6, %vm1501_vm7 }
   0xe   : > { %s1774_s12 = smov (!%p242_p4, %s1485_s12), 1 }
   0xf   : > { %s1285_s16 = sshll.u32 %s1774_s12, 4  ;;  %s1257_s20 = sshll.u32 %s1774_s12, 3 }
  0x10   : > { %s1567_s19 = scalar_lea.vmem %s1762_s1, %s1285_s16  ;;  %s248_s23 = scalar_lea.vmem %s1761_s0, %s1257_s20  ;;  %v1615_v15 = vld [vmem:[#allocation2] sm:$0xff] }
  0x11   : > { %v1570_v2 = vld [vmem:[%s1567_s19] sm:$0xff]  ;;  %v301_v3 = vld [vmem:[%s1567_s19 + $0x8] sm:$0xf]  ;;  %s1630_s27 = scalar_lea.vmem %s1763_s2, %s1285_s16  ;;  %v1692_v55 = vld [vmem:[#allocation2 + $0x10] sm:$0xff]  ;;  %s275_s8 = scalar_lea.vmem %s1764_s3, %s1257_s20 }
  0x12   : > { %v1368_v5 = vpack.c.bf16 %v301_v3, %v1570_v2  ;;  %v1589_v6 = vld [vmem:[%s248_s23] sm:$0xff]  ;;  %v303_v20 = vld [vmem:[%s1630_s27 + $0x8] sm:$0xf]  ;;  %v973_v4 = vld [vmem:[#allocation2 + $0x18] sm:$0xff] }
  0x13   : > { %502 = vrot.lane.b32.xlu1 %v1589_v6, %s1500_s24  ;;  %v1633_v19 = vld [vmem:[%s1630_s27] sm:$0xff]  ;;  %v687_v34 = vld [vmem:[%s1567_s19 + $0x8] sm:$0xf] }
  0x14   : > { %1370 = vmatpush3.bf16.xpose.msk.msra.mxu0 %vm1575_vm2, %v1368_v5  ;;  %v1372_v21 = vpack.c.bf16 %v303_v20, %v1633_v19  ;;  %v1437_v35 = vpack.i.bf16 %v687_v34, %v1570_v2  ;;  %v1668_v36 = vld [vmem:[#allocation2 + $0x8] sm:$0xff] }
  0x15   : > { %1379 = vmatprep.subr.bf16.mxu0 %v1495_v0  ;;  %v689_v57 = vld [vmem:[%s1630_s27 + $0x8] sm:$0xf] }
  0x16   : > { %1374 = vmatpush3.bf16.msk.msra.mxu1 %vm1637_vm8, %v1372_v21  ;;  %v1442_v60 = vpack.i.bf16 %v689_v57, %v1633_v19  ;;  %v603_v57 = vld [vmem:[#allocation4 + $0x8] sm:$0xff] }
  0x17   : > { %1375 = vmatprep.subr.bf16.mxu1 %v1495_v0 }
  0x1b   : > { %1316 = vmatmul.mubr.msk.f32.vlgmr.msra.gmra.mrb[0].mxu0 %vm289_vm0, %v1589_v6 }
  0x1c   : > { %1336 = vmatprep.mubr.msk.f32.mxu0 %vm1496_vm1, %v1497_v1  ;;  %1382 = vmatpush3.bf16.msk.msra.mxu0 %vm1637_vm8, %v1372_v21  ;;  %v595_v21 = vld [vmem:[#allocation3 + $0x8] sm:$0xff] }
  0x1d   : > { %1383 = vmatprep.subr.bf16.mxu0 %v1495_v0 }
  0x85   : > { %v503_v27 = vpop.permute.xlu1 %502 }
  0xee   : > { %v381_v10 = vpop.f32.mrb[0].mxu0 }
  0xef   : > { %v387_v11 = vsel %vm299_vm4, %v381_v10, -inf  ;;  %v1317_v12 = vpop.f32.mrb[1].mxu0 }
  0xf0   : > { %v390_v13 = vsel %vm389_vm5, %v387_v11, -inf }
  0xf1   : > { %391 = vmax.xlane.f32.xlu0 %v390_v13 }
 0x17e   : > { %v392_v16 = vpop.xlane.xlu0 %391 }
 0x17f   : > { %v1618_v17 = vmax.f32 %v1615_v15, %v392_v16 }
 0x181   : > { %v394_v18 = vsub.f32 %v1615_v15, %v1618_v17  ;;  %499 = vst.msk [vmem:[#allocation2] sm:$0xff] %vm280_vm3, %v1618_v17  ;;  %399 = vperm.xlu0 %1435, %v1618_v17  }
 0x185   : > { %1438 = vrot.lane.b32.xlu0 %v1437_v35, %s1500_s24 }
 0x189   : > { %692 = vrot.lane.b32.xlu0 %v1589_v6, %s1502_s28 }
 0x200   : > { %v400_v23 = vpop.permute.xlu0 %399 }
 0x201   : > { %v402_v24 = vsub.f32 %v387_v11, %v400_v23 }
 0x203   : > { %v403_v25 = vmul.f32 1.442695, %v402_v24 }
 0x204   : > { %v1439_v43 = vpop.permute.xlu0 %1438 }
 0x205   : > { %1447 = vpow2.f32 %v403_v25  ;;  %v1441_v44 = vunpack.i.h.bf16 %v1439_v43  ;;  %v1440_v45 = vunpack.i.l.bf16 %v1439_v43 }
 0x207   : > { %v1384_v46 = vpack.c.bf16 %v1441_v44, %v1440_v45  ;;  %v990_v45 = vld [vmem:[#allocation3 + $0x18] sm:$0xff] }
 0x208   : > { %v693_v48 = vpop.permute.xlu0 %692 }
 0x20f   : > { %v1647_v26 = vpop.eup %1447 }
 0x210   : > { %1323 = vmatmul.mubr.msk.f32.vlgmr.msra.gmra.mrb[0].mxu1 %vm389_vm5, %v1647_v26 }
 0x211   : > { %1378 = vmatpush3.bf16.xpose.msk.msra.mxu1 %vm1575_vm2, %v1368_v5  ;;  %1329 = vmatprep.mubr.msk.f32.mxu1 %vm1496_vm1, %v1497_v1 }
 0x212   : > { %1387 = vmatprep.subr.bf16.mxu1 %v1495_v0 }
 0x218   : > { %1330 = vmatmul.mubr.msk.f32.vlgmr.msra.gmra.mrb[2].mxu1 %vm289_vm0, %v503_v27 }
 0x219   : > { %1350 = vmatprep.mubr.msk.f32.mxu1 %vm1496_vm1, %v1497_v1 }
 0x2e3   : > { %v1659_v28 = vpop.f32.mrb[0].mxu1 }
 0x2e4   : > { %v1324_v29 = vpop.f32.mrb[1].mxu1 }
 0x2eb   : > { %v572_v30 = vpop.f32.mrb[2].mxu1 }
 0x2ec   : > { %v576_v31 = vsel %vm299_vm4, %v572_v30, -inf  ;;  %v1331_v32 = vpop.f32.mrb[3].mxu1 }
 0x2ed   : > { %v579_v33 = vsel %vm389_vm5, %v576_v31, -inf }
 0x2ee   : > { %580 = vmax.xlane.f32.xlu1 %v579_v33 }
 0x37b   : > { %v581_v37 = vpop.xlane.xlu1 %580 }
 0x37c   : > { %v1671_v38 = vmax.f32 %v1668_v36, %v581_v37  ;;  %v395_v37 = vmul.f32 1.442695, %v394_v18 }
 0x37e   : > { %v583_v39 = vsub.f32 %v1668_v36, %v1671_v38  ;;  %685 = vst.msk [vmem:[#allocation2 + $0x8] sm:$0xff] %vm280_vm3, %v1671_v38  ;;  %588 = vperm.xlu1 %1436, %v1671_v38   ;;  %v407_v36 = vsel %vm389_vm5, %v1647_v26, 0.0 }
 0x3fd   : > { %v589_v40 = vpop.permute.xlu1 %588 }
 0x3fe   : > { %v591_v41 = vsub.f32 %v576_v31, %v589_v40 }
 0x400   : > { %v592_v42 = vmul.f32 1.442695, %v591_v41 }
 0x402   : > { %1449 = vpow2.f32 %v592_v42  ;;  %v795_v42 = vld [vmem:[#allocation3 + $0x10] sm:$0xff] }
 0x40c   : > { %v1450_v47 = vpop.eup %1449 }
 0x40d   : > { %1337 = vmatmul.mubr.msk.f32.vlgmr.msra.gmra.mrb[2].mxu0 %vm389_vm5, %v1450_v47  ;;  %v597_v16 = vsel %vm389_vm5, %v1450_v47, 0.0 }
 0x40e   : > { %1386 = vmatpush3.bf16.xpose.msk.msra.mxu0 %vm1575_vm2, %v1384_v46  ;;  %1343 = vmatprep.mubr.msk.f32.mxu0 %vm1496_vm1, %v1497_v1 }
 0x40f   : > { %1395 = vmatprep.subr.bf16.mxu0 %v1495_v0 }
 0x415   : > { %1344 = vmatmul.mubr.msk.f32.vlgmr.msra.gmra.mrb[4].mxu0 %vm289_vm0, %v693_v48  ;;  %v405_v48 = vld [vmem:[#allocation3] sm:$0xff] }
 0x416   : > { %1364 = vmatprep.mubr.msk.f32.mxu0 %vm1496_vm1, %v1497_v1 }
 0x4e0   : > { %v1687_v49 = vpop.f32.mrb[2].mxu0 }
 0x4e1   : > { %v1338_v50 = vpop.f32.mrb[3].mxu0 }
 0x4e8   : > { %v772_v51 = vpop.f32.mrb[4].mxu0 }
 0x4e9   : > { %v776_v52 = vsel %vm299_vm4, %v772_v51, -inf  ;;  %v1345_v53 = vpop.f32.mrb[5].mxu0 }
 0x4ea   : > { %v779_v54 = vsel %vm389_vm5, %v776_v52, -inf }
 0x4eb   : > { %780 = vmax.xlane.f32.xlu0 %v779_v54  ;;  %v413_v54 = vld [vmem:[#allocation4] sm:$0xff] }
 0x578   : > { %v781_v56 = vpop.xlane.xlu0 %780 }
 0x579   : > { %v1696_v58 = vmax.f32 %v1692_v55, %v781_v56 }
 0x57b   : > { %v783_v59 = vsub.f32 %v1692_v55, %v1696_v58  ;;  %894 = vst.msk [vmem:[#allocation2 + $0x10] sm:$0xff] %vm280_vm3, %v1696_v58  ;;  %788 = vperm.xlu1 %1436, %v1696_v58  }
 0x57d   : > { %v784_v38 = vmul.f32 1.442695, %v783_v59 }
 0x57f   : > { %1443 = vrot.lane.b32.xlu1 %v1442_v60, %s1500_s24 }
 0x583   : > { %897 = vrot.lane.b32.xlu1 %v1589_v6, %s1503_s29 }
 0x5fa   : > { %v789_v61 = vpop.permute.xlu1 %788 }
 0x5fb   : > { %v791_v62 = vsub.f32 %v776_v52, %v789_v61 }
 0x5fd   : > { %v792_v63 = vmul.f32 1.442695, %v791_v62  ;;  %v803_v62 = vld [vmem:[#allocation4 + $0x10] sm:$0xff] }
 0x5fe   : > { %v1444_v2 = vpop.permute.xlu1 %1443 }
 0x5ff   : > { %1451 = vpow2.f32 %v792_v63  ;;  %v1446_v3 = vunpack.i.h.bf16 %v1444_v2  ;;  %v1445_v5 = vunpack.i.l.bf16 %v1444_v2 }
 0x601   : > { %v1388_v7 = vpack.c.bf16 %v1446_v3, %v1445_v5 }
 0x602   : > { %v898_v6 = vpop.permute.xlu1 %897 }
 0x603   : > { %1390 = vmatpush3.bf16.msk.msra.mxu1 %vm1637_vm8, %v1388_v7  ;;  %1398 = vmatpush3.bf16.msk.msra.mxu0 %vm1637_vm8, %v1388_v7 }
 0x604   : > { %1391 = vmatprep.subr.bf16.mxu1 %v1495_v0 }
 0x609   : > { %v1452_v8 = vpop.eup %1451 }
 0x60a   : > { %1351 = vmatmul.mubr.msk.f32.vlgmr.msra.gmra.mrb[4].mxu1 %vm389_vm5, %v1452_v8  ;;  %v797_v25 = vsel %vm389_vm5, %v1452_v8, 0.0 }
 0x60b   : > { %1357 = vmatprep.mubr.msk.f32.mxu1 %vm1496_vm1, %v1497_v1  ;;  %v584_v1 = vmul.f32 1.442695, %v583_v39 }
 0x60c   : > { %1394 = vmatpush3.bf16.xpose.msk.msra.mxu1 %vm1575_vm2, %v1384_v46 }
 0x60d   : > { %1453 = vpow2.f32 %v584_v1 }
 0x613   : > { %1358 = vmatmul.mubr.msk.f32.vlgmr.msra.gmra.mrb[6].mxu1 %vm289_vm0, %v898_v6 }
 0x617   : > { %v1454_v19 = vpop.eup %1453 }
 0x618   : > { %v596_v23 = vmul.f32 %v1454_v19, %v595_v21 }
 0x6dd   : > { %v1717_v10 = vpop.f32.mrb[4].mxu1 }
 0x6de   : > { %v1352_v11 = vpop.f32.mrb[5].mxu1 }
 0x6e6   : > { %v967_v12 = vpop.f32.mrb[6].mxu1 }
 0x6e7   : > { %v971_v13 = vsel %vm299_vm4, %v967_v12, -inf  ;;  %v1359_v0 = vpop.f32.mrb[7].mxu1 }
 0x6e8   : > { %v974_v14 = vsel %vm389_vm5, %v971_v13, -inf }
 0x6e9   : > { %975 = vmax.xlane.f32.xlu1 %v974_v14  ;;  %v998_v14 = vld [vmem:[#allocation4 + $0x18] sm:$0xff] }
 0x6ed   : > { %598 = vadd.xlane.f32.xlu1 %v597_v16 }
 0x776   : > { %v976_v20 = vpop.xlane.xlu1 %975 }
 0x777   : > { %v977_v22 = vmax.f32 %v973_v4, %v976_v20 }
 0x779   : > { %1080 = vst.msk [vmem:[#allocation2 + $0x18] sm:$0xff] %vm280_vm3, %v977_v22  ;;  %983 = vperm.xlu0 %1435, %v977_v22   ;;  %v978_v27 = vsub.f32 %v973_v4, %v977_v22 }
 0x77a   : > { %v599_v9 = vpop.xlane.xlu1 %598 }
 0x77b   : > { %v600_v24 = vadd.f32 %v599_v9, %v596_v23  ;;  %v979_v29 = vmul.f32 1.442695, %v978_v27 }
 0x77d   : > { %601 = vst.msk [vmem:[#allocation3 + $0x8] sm:$0xff] %vm280_vm3, %v600_v24  ;;  %1455 = vpow2.f32 %v979_v29 }
 0x784   : > { %v1094_v39 = vld [vmem:[#allocation3 + $0x8] sm:$0xff] }
 0x787   : > { %v1456_v30 = vpop.eup %1455 }
 0x788   : > { %v991_v46 = vmul.f32 %v1456_v30, %v990_v45 }
 0x798   : > { %798 = vadd.xlane.f32.xlu0 %v797_v25 }
 0x7ae   : > { %1001 = vperm.xlu0 %1435, %v1456_v30  }
 0x7f8   : > { %v984_v31 = vpop.permute.xlu0 %983 }
 0x7f9   : > { %v986_v32 = vsub.f32 %v971_v13, %v984_v31 }
 0x7fb   : > { %v987_v33 = vmul.f32 1.442695, %v986_v32 }
 0x7fd   : > { %1457 = vpow2.f32 %v987_v33 }
 0x7fe   : > { %1459 = vpow2.f32 %v395_v37 }
 0x7ff   : > { %1461 = vpow2.f32 %v784_v38 }
 0x800   : > { %1463 = vrcp.f32 %v1094_v39 }
 0x807   : > { %v1458_v34 = vpop.eup %1457 }
 0x808   : > { %1365 = vmatmul.mubr.msk.f32.vlgmr.msra.gmra.mrb[6].mxu0 %vm389_vm5, %v1458_v34  ;;  %v992_v35 = vsel %vm389_vm5, %v1458_v34, 0.0  ;;  %v1460_v40 = vpop.eup %1459 }
 0x809   : > { %993 = vadd.xlane.f32.xlu1 %v992_v35  ;;  %v1462_v41 = vpop.eup %1461  ;;  %v406_v51 = vmul.f32 %v1460_v40, %v405_v48 }
 0x80a   : > { %v796_v43 = vmul.f32 %v1462_v41, %v795_v42  ;;  %v1464_v15 = vpop.eup %1463 }
 0x80d   : > { %408 = vadd.xlane.f32.xlu1 %v407_v36 }
 0x81e   : > { %416 = vperm.xlu1 %1436, %v1460_v40  }
 0x822   : > { %606 = vperm.xlu1 %1436, %v1454_v19  }
 0x825   : > { %v799_v26 = vpop.xlane.xlu0 %798 }
 0x826   : > { %v800_v44 = vadd.f32 %v799_v26, %v796_v43  ;;  %806 = vperm.xlu1 %1436, %v1462_v41  }
 0x828   : > { %801 = vst.msk [vmem:[#allocation3 + $0x10] sm:$0xff] %vm280_vm3, %v800_v44 }
 0x82a   : > { %1099 = vperm.xlu1 %1436, %v1464_v15  }
 0x82d   : > { %v1002_v16 = vpop.permute.xlu0 %1001 }
 0x82f   : > { %v1109_v17 = vld [vmem:[#allocation3 + $0x10] sm:$0xff] }
 0x830   : > { %1465 = vrcp.f32 %v1109_v17 }
 0x83a   : > { %v1466_v18 = vpop.eup %1465 }
 0x83b   : > { %1114 = vperm.xlu1 %1436, %v1466_v18  }
 0x896   : > { %v994_v47 = vpop.xlane.xlu1 %993 }
 0x897   : > { %v995_v50 = vadd.f32 %v994_v47, %v991_v46 }
 0x899   : > { %996 = vst.msk [vmem:[#allocation3 + $0x18] sm:$0xff] %vm280_vm3, %v995_v50 }
 0x89a   : > { %v409_v52 = vpop.xlane.xlu1 %408 }
 0x89b   : > { %v410_v53 = vadd.f32 %v409_v52, %v406_v51 }
 0x89d   : > { %412 = vst.msk [vmem:[#allocation3] sm:$0xff] %vm280_vm3, %v410_v53 }
 0x89e   : > { %v417_v55 = vpop.permute.xlu1 %416 }
 0x89f   : > { %v419_v56 = vmul.f32 %v417_v55, %v413_v54 }
 0x8a0   : > { %v1124_v58 = vld [vmem:[#allocation3 + $0x18] sm:$0xff] }
 0x8a1   : > { %v497_v59 = vadd.f32 %v1659_v28, %v419_v56  ;;  %1467 = vrcp.f32 %v1124_v58 }
 0x8a2   : > { %v607_v60 = vpop.permute.xlu1 %606 }
 0x8a3   : > { %498 = vst.msk [vmem:[#allocation4] sm:$0xff] %vm289_vm0, %v497_v59  ;;  %v609_v61 = vmul.f32 %v607_v60, %v603_v57 }
 0x8a4   : > { %v1084_v63 = vld [vmem:[#allocation3] sm:$0xff] }
 0x8a5   : > { %v683_v2 = vadd.f32 %v1687_v49, %v609_v61  ;;  %1469 = vrcp.f32 %v1084_v63 }
 0x8a6   : > { %v807_v3 = vpop.permute.xlu1 %806 }
 0x8a7   : > { %684 = vst.msk [vmem:[#allocation4 + $0x8] sm:$0xff] %vm289_vm0, %v683_v2  ;;  %v809_v5 = vmul.f32 %v807_v3, %v803_v62 }
 0x8a9   : > { %v892_v7 = vadd.f32 %v1717_v10, %v809_v5  ;;  %v1004_v10 = vmul.f32 %v1002_v16, %v998_v14 }
 0x8aa   : > { %v1100_v11 = vpop.permute.xlu1 %1099  ;;  %v1086_v23 = vld [vmem:[#allocation4] sm:$0xff] }
 0x8ab   : > { %v1468_v8 = vpop.eup %1467  ;;  %893 = vst.msk [vmem:[#allocation4 + $0x10] sm:$0xff] %vm289_vm0, %v892_v7 }
 0x8ac   : > { %1129 = vperm.xlu1 %1436, %v1468_v8  }
 0x8ae   : > { %v1096_v6 = vld [vmem:[#allocation4 + $0x8] sm:$0xff] }
 0x8af   : > { %v1470_v28 = vpop.eup %1469  ;;  %v1102_v12 = vmul.f32 %v1100_v11, %v1096_v6 }
 0x8b0   : > { %1089 = vperm.xlu1 %1436, %v1470_v28  }
 0x8b2   : > { %v1111_v13 = vld [vmem:[#allocation4 + $0x10] sm:$0xff] }
 0x8b4   : > { %1104 = vrot.lane.b32.xlu1 %v1102_v12, %s1504_s30 }
 0x8ba   : > { %v1115_v49 = vpop.permute.xlu1 %1114 }
 0x8bb   : > { %v1117_v0 = vmul.f32 %v1115_v49, %v1111_v13 }
 0x8bd   : > { %1119 = vrot.lane.b32.xlu0 %v1117_v0, %s1505_s4 }
 0x8db   : > { %v1074_v1 = vpop.f32.mrb[6].mxu0 }
 0x8dc   : > { %v1078_v4 = vadd.f32 %v1074_v1, %v1004_v10  ;;  %v1366_v19 = vpop.f32.mrb[7].mxu0 }
 0x8de   : > { %1079 = vst.msk [vmem:[#allocation4 + $0x18] sm:$0xff] %vm289_vm0, %v1078_v4 }
 0x8e5   : > { %v1126_v21 = vld [vmem:[#allocation4 + $0x18] sm:$0xff] }
 0x92b   : > { %v1130_v20 = vpop.permute.xlu1 %1129 }
 0x92c   : > { %v1132_v22 = vmul.f32 %v1130_v20, %v1126_v21 }
 0x92e   : > { %1134 = vrot.lane.b32.xlu1 %v1132_v22, %s1506_s5 }
 0x92f   : > { %v1090_v9 = vpop.permute.xlu1 %1089  ;;  %v1120_v27 = vpop.permute.xlu0 %1119 }
 0x930   : > { %v1092_v24 = vmul.f32 %v1090_v9, %v1086_v23 }
 0x932   : > { %1093 = vst.msk [vmem:[%s275_s8] sm:$0xff] %vm289_vm0, %v1092_v24 }
 0x933   : > { %v1105_v25 = vpop.permute.xlu1 %1104 }
 0x934   : > { %1108 = vst.msk [vmem:[%s275_s8] sm:$0xff] %vm1107_vm9, %v1105_v25 }
 0x935   : > { %1123 = vst.msk [vmem:[%s275_s8] sm:$0xff] %vm1122_vm10, %v1120_v27 }
 0x9a0   : > { %v1135_v29 = vpop.permute.xlu1 %1134 }
 0x9a1   : > { %1138 = vst.msk [vmem:[%s275_s8] sm:$0xff] %vm1137_vm11, %v1135_v29 }
 0x9a2 PF: > { %s13_s14 = sadd.s32 1, %s1493_s14   ;;  %s1769_s12 = smov %s1489_s13 }
 0x9a3   : > { %p10_p5 = scmp.ge.s32.totalorder %s13_s14, 4   ;;  %s1770_s13 = smov %s1772_s15 }
 0x9a5   :  { %12 = sbr.rel (!%p10_p5) target bundleno = 2 (0x2), region = 85 }

</bundles_post_ra>
